<compile_context>
chip_gen: v5e
topology: v5e:2x2
jax: 0.10.0
libtpu: 0.0.40
codegen_flags: <defaults>
</compile_context>

<pallas_src>
import functools

import jax
import jax.numpy as jnp
from jax.experimental import pallas as pl
from jax.experimental.pallas import tpu as pltpu

LEAKY_SLOPE = 0.01  # torch.nn.LeakyReLU default negative_slope


def _autoencoder_kernel(*refs, n_layers: int):
    """Fused 8-layer MLP on one batch tile.

    refs = (x_ref, w0, b0, w1, b1, ..., w{n-1}, b{n-1}, o_ref)
    """
    x_ref = refs[0]
    o_ref = refs[-1]
    param_refs = refs[1:-1]

    # Layers with NO activation: last encoder layer (embedding) and last decoder layer.
    no_act = (n_layers // 2 - 1, n_layers - 1)

    h = x_ref[...].astype(jnp.float32)
    for layer in range(n_layers):
        w = param_refs[2 * layer][...]
        b = param_refs[2 * layer + 1][...]          # (1, out) -> broadcasts over rows
        # MXU matmul in the weight dtype (bf16 by default), f32 accumulation.
        y = jnp.dot(h.astype(w.dtype), w, preferred_element_type=jnp.float32)
        y = y + b.astype(jnp.float32)
        if layer not in no_act:
            y = jnp.maximum(y, LEAKY_SLOPE * y)      # LeakyReLU (slope < 1)
        h = y
    o_ref[...] = h.astype(o_ref.dtype)


def _round_up(x: int, m: int) -> int:
    return ((x + m - 1) // m) * m


def _pick_batch_tile(batch: int, max_tile: int = 512) -> tuple[int, int]:
    """Return (padded_batch, tile_rows).

    - multiples of 8 (sublane aligned), tile divides padded batch exactly,
    - >= 2 grid steps whenever the (8-padded) batch allows it, so the 'parallel'
      grid axis can be sharded across v7x's two TensorCores,
    - a simple cost model (padded rows + per-step overhead in row-equivalents)
      trades per-step / per-tile MXU fill-drain overhead against padding waste,
      so batches just above a tile multiple are not padded ~2x.
    """
    padded8 = max(8, _round_up(batch, 8))
    step_overhead_rows = 96  # ~0.35us per grid step expressed as row-equivalents
    best = None
    tm = 8
    while tm <= max(8, max_tile):
        padded = _round_up(padded8, tm)
        steps = padded // tm
        if padded8 >= 16 and steps < 2:
            tm *= 2
            continue  # keep >= 2 grid steps (v7x megacore) when the batch allows
        cost = padded + steps * step_overhead_rows
        if best is None or cost < best[0] or (cost == best[0] and tm > best[2]):
            best = (cost, padded, tm)
        tm *= 2
    return best[1], best[2]


@functools.partial(jax.jit, static_argnames=("param_dtype",))
def autoencoder_forward(x, params, param_dtype=jnp.bfloat16):
    """x: (B, input_dim); params: list of 8 (W(in,out), b(out,)) -> (B, input_dim).

    param_dtype: dtype to cast weights to for the MXU (default bf16 production
    path, f32 accumulation).  Pass None to keep the weights' original dtype.
    """
    B, in_dim = x.shape
    n_layers = len(params)
    out_dim = params[-1][1].shape[0]

    # Lane-pad boundary feature dims to multiples of 128 (unmasked vld/vst).
    in_dim_p = max(128, _round_up(in_dim, 128))
    out_dim_p = max(128, _round_up(out_dim, 128))

    padded_B, tm = _pick_batch_tile(B)
    if padded_B != B or in_dim_p != in_dim:
        x = jnp.pad(x, ((0, padded_B - B), (0, in_dim_p - in_dim)))

    # Flatten params; biases hoisted to f32 (1, out) once on the host.
    flat_params = []
    param_specs = []
    for layer, (w, b) in enumerate(params):
        if layer == 0 and in_dim_p != w.shape[0]:
            w = jnp.pad(w, ((0, in_dim_p - w.shape[0]), (0, 0)))            # zero rows
        if layer == n_layers - 1 and out_dim_p != w.shape[1]:
            w = jnp.pad(w, ((0, 0), (0, out_dim_p - w.shape[1])))           # zero cols
            b = jnp.pad(b, (0, out_dim_p - b.shape[0]))
        if param_dtype is not None:
            w = w.astype(param_dtype)
        b2 = b.astype(jnp.float32).reshape(1, -1)
        flat_params += [w, b2]
        param_specs += [
            pl.BlockSpec(w.shape, lambda i: (0, 0)),    # VMEM-resident across batch tiles
            pl.BlockSpec(b2.shape, lambda i: (0, 0)),
        ]

    kernel = functools.partial(_autoencoder_kernel, n_layers=n_layers)

    out = pl.pallas_call(
        kernel,
        out_shape=jax.ShapeDtypeStruct((padded_B, out_dim_p), x.dtype),
        grid=(padded_B // tm,),
        in_specs=[pl.BlockSpec((tm, in_dim_p), lambda i: (i, 0))] + param_specs,
        out_specs=pl.BlockSpec((tm, out_dim_p), lambda i: (i, 0)),
        compiler_params=pltpu.CompilerParams(
            dimension_semantics=("parallel",),
        ),
    )(x, *flat_params)

    return out[:B, :out_dim]


def init_params(key, input_dim: int, embedding_size: int, dtype=jnp.float32):
    """PyTorch Linear default init (U[-1/sqrt(fan_in), 1/sqrt(fan_in)]); W stored (in, out)."""
    dims = [
        # encoder
        (input_dim, 512), (512, 256), (256, 128), (128, embedding_size),
        # decoder
        (embedding_size, 128), (128, 256), (256, 512), (512, input_dim),
    ]
    params = []
    for (fan_in, fan_out) in dims:
        key, kw, kb = jax.random.split(key, 3)
        bound = 1.0 / (fan_in ** 0.5)
        w = jax.random.uniform(kw, (fan_in, fan_out), dtype, -bound, bound)
        b = jax.random.uniform(kb, (fan_out,), dtype, -bound, bound)
        params.append((w, b))
    return params


def reference_forward(x, params):
    """Pure-JAX reference with the same cast/accumulation semantics as the kernel."""
    h = x.astype(jnp.float32)
    n = len(params)
    no_act = (n // 2 - 1, n - 1)
    for i, (w, b) in enumerate(params):
        h = jnp.dot(h.astype(w.dtype), w, preferred_element_type=jnp.float32)
        h = h + b.astype(jnp.float32)
        if i not in no_act:
            h = jnp.maximum(h, LEAKY_SLOPE * h)
    return h.astype(x.dtype)


if __name__ == "__main__":
    input_dim = 64
    embedding_size = 32

    key = jax.random.PRNGKey(0)
    k_params, k_x = jax.random.split(key)
    params = init_params(k_params, input_dim, embedding_size, dtype=jnp.float32)

    # Small batch (2) plus a ragged batch (20) that exercises multi-tile + row padding.
    for batch in (2, 20):
        x = jax.random.normal(jax.random.fold_in(k_x, batch), (batch, input_dim),
                              jnp.float32)

        # f32 path: tight numerical check against the pure-JAX reference.
        out_f32 = jax.block_until_ready(autoencoder_forward(x, params, param_dtype=None))
        ref_f32 = reference_forward(x, params)
        assert out_f32.shape == (batch, input_dim), out_f32.shape
        assert jnp.allclose(out_f32, ref_f32, atol=1e-4, rtol=1e-4), \
            f"f32 max err {jnp.max(jnp.abs(out_f32 - ref_f32))}"

        # Default production path: bf16 weights on the MXU, f32 accumulation.
        out_bf16 = jax.block_until_ready(autoencoder_forward(x, params))
        ref_bf16 = reference_forward(x, [(w.astype(jnp.bfloat16), b) for w, b in params])
        assert out_bf16.shape == (batch, input_dim), out_bf16.shape
        assert jnp.allclose(out_bf16, ref_bf16, atol=2e-2, rtol=2e-2), \
            f"bf16 max err {jnp.max(jnp.abs(out_bf16 - ref_bf16))}"

    print("KERNEL_OK")
</pallas_src>

<mosaic_0001>
module attributes {stable_mosaic.version = 11 : i64} {
  func.func @_autoencoder_kernel(%arg0: i32, %arg1: memref<8x128xf32, #tpu.memory_space<vmem>>, %arg2: memref<128x512xf32, #tpu.memory_space<vmem>>, %arg3: memref<1x512xf32, #tpu.memory_space<vmem>>, %arg4: memref<512x256xf32, #tpu.memory_space<vmem>>, %arg5: memref<1x256xf32, #tpu.memory_space<vmem>>, %arg6: memref<256x128xf32, #tpu.memory_space<vmem>>, %arg7: memref<1x128xf32, #tpu.memory_space<vmem>>, %arg8: memref<128x32xf32, #tpu.memory_space<vmem>>, %arg9: memref<1x32xf32, #tpu.memory_space<vmem>>, %arg10: memref<32x128xf32, #tpu.memory_space<vmem>>, %arg11: memref<1x128xf32, #tpu.memory_space<vmem>>, %arg12: memref<128x256xf32, #tpu.memory_space<vmem>>, %arg13: memref<1x256xf32, #tpu.memory_space<vmem>>, %arg14: memref<256x512xf32, #tpu.memory_space<vmem>>, %arg15: memref<1x512xf32, #tpu.memory_space<vmem>>, %arg16: memref<512x128xf32, #tpu.memory_space<vmem>>, %arg17: memref<1x128xf32, #tpu.memory_space<vmem>>, %arg18: memref<8x128xf32, #tpu.memory_space<vmem>>) attributes {dimension_semantics = [#tpu.dimension_semantics<parallel>], iteration_bounds = array<i64: 1>, scalar_prefetch = 0 : i64, scratch_operands = 0 : i64, tpu.core_type = #tpu.core_type<tc>, window_params = [{transform_indices = @transform_0, window_bounds = array<i64: 8, 128>}, {pipeline_mode = #tpu.pipeline_mode<synchronous>, transform_indices = @transform_1, window_bounds = array<i64: 128, 512>}, {pipeline_mode = #tpu.pipeline_mode<synchronous>, transform_indices = @transform_2, window_bounds = array<i64: 1, 512>}, {pipeline_mode = #tpu.pipeline_mode<synchronous>, transform_indices = @transform_3, window_bounds = array<i64: 512, 256>}, {pipeline_mode = #tpu.pipeline_mode<synchronous>, transform_indices = @transform_4, window_bounds = array<i64: 1, 256>}, {pipeline_mode = #tpu.pipeline_mode<synchronous>, transform_indices = @transform_5, window_bounds = array<i64: 256, 128>}, {pipeline_mode = #tpu.pipeline_mode<synchronous>, transform_indices = @transform_6, window_bounds = array<i64: 1, 128>}, {pipeline_mode = #tpu.pipeline_mode<synchronous>, transform_indices = @transform_7, window_bounds = array<i64: 128, 32>}, {pipeline_mode = #tpu.pipeline_mode<synchronous>, transform_indices = @transform_8, window_bounds = array<i64: 1, 32>}, {pipeline_mode = #tpu.pipeline_mode<synchronous>, transform_indices = @transform_9, window_bounds = array<i64: 32, 128>}, {pipeline_mode = #tpu.pipeline_mode<synchronous>, transform_indices = @transform_10, window_bounds = array<i64: 1, 128>}, {pipeline_mode = #tpu.pipeline_mode<synchronous>, transform_indices = @transform_11, window_bounds = array<i64: 128, 256>}, {pipeline_mode = #tpu.pipeline_mode<synchronous>, transform_indices = @transform_12, window_bounds = array<i64: 1, 256>}, {pipeline_mode = #tpu.pipeline_mode<synchronous>, transform_indices = @transform_13, window_bounds = array<i64: 256, 512>}, {pipeline_mode = #tpu.pipeline_mode<synchronous>, transform_indices = @transform_14, window_bounds = array<i64: 1, 512>}, {pipeline_mode = #tpu.pipeline_mode<synchronous>, transform_indices = @transform_15, window_bounds = array<i64: 512, 128>}, {pipeline_mode = #tpu.pipeline_mode<synchronous>, transform_indices = @transform_16, window_bounds = array<i64: 1, 128>}, {transform_indices = @transform_17, window_bounds = array<i64: 8, 128>}]} {
    %c0 = arith.constant 0 : index
    %c0_0 = arith.constant 0 : index
    %0 = vector.load %arg1[%c0, %c0_0] : memref<8x128xf32, #tpu.memory_space<vmem>>, vector<8x128xf32>
    %c0_1 = arith.constant 0 : index
    %c0_2 = arith.constant 0 : index
    %1 = vector.load %arg2[%c0_1, %c0_2] : memref<128x512xf32, #tpu.memory_space<vmem>>, vector<128x512xf32>
    %c0_3 = arith.constant 0 : index
    %c0_4 = arith.constant 0 : index
    %2 = vector.load %arg3[%c0_3, %c0_4] : memref<1x512xf32, #tpu.memory_space<vmem>>, vector<1x512xf32>
    %cst = arith.constant dense<0.000000e+00> : vector<8x512xf32>
    %3 = tpu.matmul %0, %1, %cst {dimension_numbers = #tpu.dot_dimension_numbers<[1], [0], [0], [1], [0, 0, 1, 1], [], []>} : vector<8x128xf32>, vector<128x512xf32>, vector<8x512xf32> -> vector<8x512xf32>
    %4 = vector.broadcast %2 : vector<1x512xf32> to vector<8x512xf32>
    %5 = arith.addf %3, %4 : vector<8x512xf32>
    %cst_5 = arith.constant 0.00999999977 : f32
    %6 = vector.broadcast %cst_5 : f32 to vector<8x512xf32>
    %7 = arith.mulf %6, %5 : vector<8x512xf32>
    %8 = arith.maximumf %5, %7 : vector<8x512xf32>
    %c0_6 = arith.constant 0 : index
    %c0_7 = arith.constant 0 : index
    %9 = vector.load %arg4[%c0_6, %c0_7] : memref<512x256xf32, #tpu.memory_space<vmem>>, vector<512x256xf32>
    %c0_8 = arith.constant 0 : index
    %c0_9 = arith.constant 0 : index
    %10 = vector.load %arg5[%c0_8, %c0_9] : memref<1x256xf32, #tpu.memory_space<vmem>>, vector<1x256xf32>
    %cst_10 = arith.constant dense<0.000000e+00> : vector<8x256xf32>
    %11 = tpu.matmul %8, %9, %cst_10 {dimension_numbers = #tpu.dot_dimension_numbers<[1], [0], [0], [1], [0, 0, 1, 1], [], []>} : vector<8x512xf32>, vector<512x256xf32>, vector<8x256xf32> -> vector<8x256xf32>
    %12 = vector.broadcast %10 : vector<1x256xf32> to vector<8x256xf32>
    %13 = arith.addf %11, %12 : vector<8x256xf32>
    %cst_11 = arith.constant 0.00999999977 : f32
    %14 = vector.broadcast %cst_11 : f32 to vector<8x256xf32>
    %15 = arith.mulf %14, %13 : vector<8x256xf32>
    %16 = arith.maximumf %13, %15 : vector<8x256xf32>
    %c0_12 = arith.constant 0 : index
    %c0_13 = arith.constant 0 : index
    %17 = vector.load %arg6[%c0_12, %c0_13] : memref<256x128xf32, #tpu.memory_space<vmem>>, vector<256x128xf32>
    %c0_14 = arith.constant 0 : index
    %c0_15 = arith.constant 0 : index
    %18 = vector.load %arg7[%c0_14, %c0_15] : memref<1x128xf32, #tpu.memory_space<vmem>>, vector<1x128xf32>
    %cst_16 = arith.constant dense<0.000000e+00> : vector<8x128xf32>
    %19 = tpu.matmul %16, %17, %cst_16 {dimension_numbers = #tpu.dot_dimension_numbers<[1], [0], [0], [1], [0, 0, 1, 1], [], []>} : vector<8x256xf32>, vector<256x128xf32>, vector<8x128xf32> -> vector<8x128xf32>
    %20 = vector.broadcast %18 : vector<1x128xf32> to vector<8x128xf32>
    %21 = arith.addf %19, %20 : vector<8x128xf32>
    %cst_17 = arith.constant 0.00999999977 : f32
    %22 = vector.broadcast %cst_17 : f32 to vector<8x128xf32>
    %23 = arith.mulf %22, %21 : vector<8x128xf32>
    %24 = arith.maximumf %21, %23 : vector<8x128xf32>
    %c0_18 = arith.constant 0 : index
    %c0_19 = arith.constant 0 : index
    %25 = vector.load %arg8[%c0_18, %c0_19] : memref<128x32xf32, #tpu.memory_space<vmem>>, vector<128x32xf32>
    %c0_20 = arith.constant 0 : index
    %c0_21 = arith.constant 0 : index
    %26 = vector.load %arg9[%c0_20, %c0_21] : memref<1x32xf32, #tpu.memory_space<vmem>>, vector<1x32xf32>
    %cst_22 = arith.constant dense<0.000000e+00> : vector<8x32xf32>
    %27 = tpu.matmul %24, %25, %cst_22 {dimension_numbers = #tpu.dot_dimension_numbers<[1], [0], [0], [1], [0, 0, 1, 1], [], []>} : vector<8x128xf32>, vector<128x32xf32>, vector<8x32xf32> -> vector<8x32xf32>
    %28 = vector.broadcast %26 : vector<1x32xf32> to vector<8x32xf32>
    %29 = arith.addf %27, %28 : vector<8x32xf32>
    %c0_23 = arith.constant 0 : index
    %c0_24 = arith.constant 0 : index
    %30 = vector.load %arg10[%c0_23, %c0_24] : memref<32x128xf32, #tpu.memory_space<vmem>>, vector<32x128xf32>
    %c0_25 = arith.constant 0 : index
    %c0_26 = arith.constant 0 : index
    %31 = vector.load %arg11[%c0_25, %c0_26] : memref<1x128xf32, #tpu.memory_space<vmem>>, vector<1x128xf32>
    %cst_27 = arith.constant dense<0.000000e+00> : vector<8x128xf32>
    %32 = tpu.matmul %29, %30, %cst_27 {dimension_numbers = #tpu.dot_dimension_numbers<[1], [0], [0], [1], [0, 0, 1, 1], [], []>} : vector<8x32xf32>, vector<32x128xf32>, vector<8x128xf32> -> vector<8x128xf32>
    %33 = vector.broadcast %31 : vector<1x128xf32> to vector<8x128xf32>
    %34 = arith.addf %32, %33 : vector<8x128xf32>
    %cst_28 = arith.constant 0.00999999977 : f32
    %35 = vector.broadcast %cst_28 : f32 to vector<8x128xf32>
    %36 = arith.mulf %35, %34 : vector<8x128xf32>
    %37 = arith.maximumf %34, %36 : vector<8x128xf32>
    %c0_29 = arith.constant 0 : index
    %c0_30 = arith.constant 0 : index
    %38 = vector.load %arg12[%c0_29, %c0_30] : memref<128x256xf32, #tpu.memory_space<vmem>>, vector<128x256xf32>
    %c0_31 = arith.constant 0 : index
    %c0_32 = arith.constant 0 : index
    %39 = vector.load %arg13[%c0_31, %c0_32] : memref<1x256xf32, #tpu.memory_space<vmem>>, vector<1x256xf32>
    %cst_33 = arith.constant dense<0.000000e+00> : vector<8x256xf32>
    %40 = tpu.matmul %37, %38, %cst_33 {dimension_numbers = #tpu.dot_dimension_numbers<[1], [0], [0], [1], [0, 0, 1, 1], [], []>} : vector<8x128xf32>, vector<128x256xf32>, vector<8x256xf32> -> vector<8x256xf32>
    %41 = vector.broadcast %39 : vector<1x256xf32> to vector<8x256xf32>
    %42 = arith.addf %40, %41 : vector<8x256xf32>
    %cst_34 = arith.constant 0.00999999977 : f32
    %43 = vector.broadcast %cst_34 : f32 to vector<8x256xf32>
    %44 = arith.mulf %43, %42 : vector<8x256xf32>
    %45 = arith.maximumf %42, %44 : vector<8x256xf32>
    %c0_35 = arith.constant 0 : index
    %c0_36 = arith.constant 0 : index
    %46 = vector.load %arg14[%c0_35, %c0_36] : memref<256x512xf32, #tpu.memory_space<vmem>>, vector<256x512xf32>
    %c0_37 = arith.constant 0 : index
    %c0_38 = arith.constant 0 : index
    %47 = vector.load %arg15[%c0_37, %c0_38] : memref<1x512xf32, #tpu.memory_space<vmem>>, vector<1x512xf32>
    %cst_39 = arith.constant dense<0.000000e+00> : vector<8x512xf32>
    %48 = tpu.matmul %45, %46, %cst_39 {dimension_numbers = #tpu.dot_dimension_numbers<[1], [0], [0], [1], [0, 0, 1, 1], [], []>} : vector<8x256xf32>, vector<256x512xf32>, vector<8x512xf32> -> vector<8x512xf32>
    %49 = vector.broadcast %47 : vector<1x512xf32> to vector<8x512xf32>
    %50 = arith.addf %48, %49 : vector<8x512xf32>
    %cst_40 = arith.constant 0.00999999977 : f32
    %51 = vector.broadcast %cst_40 : f32 to vector<8x512xf32>
    %52 = arith.mulf %51, %50 : vector<8x512xf32>
    %53 = arith.maximumf %50, %52 : vector<8x512xf32>
    %c0_41 = arith.constant 0 : index
    %c0_42 = arith.constant 0 : index
    %54 = vector.load %arg16[%c0_41, %c0_42] : memref<512x128xf32, #tpu.memory_space<vmem>>, vector<512x128xf32>
    %c0_43 = arith.constant 0 : index
    %c0_44 = arith.constant 0 : index
    %55 = vector.load %arg17[%c0_43, %c0_44] : memref<1x128xf32, #tpu.memory_space<vmem>>, vector<1x128xf32>
    %cst_45 = arith.constant dense<0.000000e+00> : vector<8x128xf32>
    %56 = tpu.matmul %53, %54, %cst_45 {dimension_numbers = #tpu.dot_dimension_numbers<[1], [0], [0], [1], [0, 0, 1, 1], [], []>} : vector<8x512xf32>, vector<512x128xf32>, vector<8x128xf32> -> vector<8x128xf32>
    %57 = vector.broadcast %55 : vector<1x128xf32> to vector<8x128xf32>
    %58 = arith.addf %56, %57 : vector<8x128xf32>
    %c0_46 = arith.constant 0 : index
    %c0_47 = arith.constant 0 : index
    %59 = vector.load %arg18[%c0_46, %c0_47] : memref<8x128xf32, #tpu.memory_space<vmem>>, vector<8x128xf32>
    tpu.vector_store %arg18[%c0_46, %c0_47], %58 {strides = array<i32>} : memref<8x128xf32, #tpu.memory_space<vmem>>, vector<8x128xf32>,
    return
  }
  func.func @transform_0(%arg0: i32) -> (i32, i32) {
    %c0_i32 = arith.constant 0 : i32
    %c0_i32_0 = arith.constant 0 : i32
    return %arg0, %c0_i32 : i32, i32
  }
  func.func @transform_1(%arg0: i32) -> (i32, i32) {
    %c0_i32 = arith.constant 0 : i32
    %c0_i32_0 = arith.constant 0 : i32
    %c0_i32_1 = arith.constant 0 : i32
    return %c0_i32, %c0_i32_0 : i32, i32
  }
  func.func @transform_2(%arg0: i32) -> (i32, i32) {
    %c0_i32 = arith.constant 0 : i32
    %c0_i32_0 = arith.constant 0 : i32
    %c0_i32_1 = arith.constant 0 : i32
    return %c0_i32, %c0_i32_0 : i32, i32
  }
  func.func @transform_3(%arg0: i32) -> (i32, i32) {
    %c0_i32 = arith.constant 0 : i32
    %c0_i32_0 = arith.constant 0 : i32
    %c0_i32_1 = arith.constant 0 : i32
    return %c0_i32, %c0_i32_0 : i32, i32
  }
  func.func @transform_4(%arg0: i32) -> (i32, i32) {
    %c0_i32 = arith.constant 0 : i32
    %c0_i32_0 = arith.constant 0 : i32
    %c0_i32_1 = arith.constant 0 : i32
    return %c0_i32, %c0_i32_0 : i32, i32
  }
  func.func @transform_5(%arg0: i32) -> (i32, i32) {
    %c0_i32 = arith.constant 0 : i32
    %c0_i32_0 = arith.constant 0 : i32
    %c0_i32_1 = arith.constant 0 : i32
    return %c0_i32, %c0_i32_0 : i32, i32
  }
  func.func @transform_6(%arg0: i32) -> (i32, i32) {
    %c0_i32 = arith.constant 0 : i32
    %c0_i32_0 = arith.constant 0 : i32
    %c0_i32_1 = arith.constant 0 : i32
    return %c0_i32, %c0_i32_0 : i32, i32
  }
  func.func @transform_7(%arg0: i32) -> (i32, i32) {
    %c0_i32 = arith.constant 0 : i32
    %c0_i32_0 = arith.constant 0 : i32
    %c0_i32_1 = arith.constant 0 : i32
    return %c0_i32, %c0_i32_0 : i32, i32
  }
  func.func @transform_8(%arg0: i32) -> (i32, i32) {
    %c0_i32 = arith.constant 0 : i32
    %c0_i32_0 = arith.constant 0 : i32
    %c0_i32_1 = arith.constant 0 : i32
    return %c0_i32, %c0_i32_0 : i32, i32
  }
  func.func @transform_9(%arg0: i32) -> (i32, i32) {
    %c0_i32 = arith.constant 0 : i32
    %c0_i32_0 = arith.constant 0 : i32
    %c0_i32_1 = arith.constant 0 : i32
    return %c0_i32, %c0_i32_0 : i32, i32
  }
  func.func @transform_10(%arg0: i32) -> (i32, i32) {
    %c0_i32 = arith.constant 0 : i32
    %c0_i32_0 = arith.constant 0 : i32
    %c0_i32_1 = arith.constant 0 : i32
    return %c0_i32, %c0_i32_0 : i32, i32
  }
  func.func @transform_11(%arg0: i32) -> (i32, i32) {
    %c0_i32 = arith.constant 0 : i32
    %c0_i32_0 = arith.constant 0 : i32
    %c0_i32_1 = arith.constant 0 : i32
    return %c0_i32, %c0_i32_0 : i32, i32
  }
  func.func @transform_12(%arg0: i32) -> (i32, i32) {
    %c0_i32 = arith.constant 0 : i32
    %c0_i32_0 = arith.constant 0 : i32
    %c0_i32_1 = arith.constant 0 : i32
    return %c0_i32, %c0_i32_0 : i32, i32
  }
  func.func @transform_13(%arg0: i32) -> (i32, i32) {
    %c0_i32 = arith.constant 0 : i32
    %c0_i32_0 = arith.constant 0 : i32
    %c0_i32_1 = arith.constant 0 : i32
    return %c0_i32, %c0_i32_0 : i32, i32
  }
  func.func @transform_14(%arg0: i32) -> (i32, i32) {
    %c0_i32 = arith.constant 0 : i32
    %c0_i32_0 = arith.constant 0 : i32
    %c0_i32_1 = arith.constant 0 : i32
    return %c0_i32, %c0_i32_0 : i32, i32
  }
  func.func @transform_15(%arg0: i32) -> (i32, i32) {
    %c0_i32 = arith.constant 0 : i32
    %c0_i32_0 = arith.constant 0 : i32
    %c0_i32_1 = arith.constant 0 : i32
    return %c0_i32, %c0_i32_0 : i32, i32
  }
  func.func @transform_16(%arg0: i32) -> (i32, i32) {
    %c0_i32 = arith.constant 0 : i32
    %c0_i32_0 = arith.constant 0 : i32
    %c0_i32_1 = arith.constant 0 : i32
    return %c0_i32, %c0_i32_0 : i32, i32
  }
  func.func @transform_17(%arg0: i32) -> (i32, i32) {
    %c0_i32 = arith.constant 0 : i32
    %c0_i32_0 = arith.constant 0 : i32
    return %arg0, %c0_i32 : i32, i32
  }
}

</mosaic_0001>

<bundles_post_ra>
// kernel: autoencoder_forward.1
= control target key start
LH: loop header
LB: loop body
LE: loop exit
PB: predicated region body
PF: predicated region fallthrough
CT: control target
= control target key end

     0   :  { %s2695_s0 = inlined_call_operand.vmem [shape: f32[8,128], index: 0, kind: input, shape index: {}]   ;;  %s2696_s1 = inlined_call_operand.vmem [shape: f32[128,512], index: 1, kind: input, shape index: {}]   ;;  %s2697_s2 = inlined_call_operand.vmem [shape: f32[1,512], index: 2, kind: input, shape index: {}]   ;;  %s2698_s3 = inlined_call_operand.vmem [shape: f32[512,256], index: 3, kind: input, shape index: {}]   ;;  %s2699_s4 = inlined_call_operand.vmem [shape: f32[1,256], index: 4, kind: input, shape index: {}]   ;;  %s2700_s5 = inlined_call_operand.vmem [shape: f32[256,128], index: 5, kind: input, shape index: {}]   ;;  %s2701_s6 = inlined_call_operand.vmem [shape: f32[1,128], index: 6, kind: input, shape index: {}]   ;;  %s2702_s7 = inlined_call_operand.vmem [shape: f32[128,32], index: 7, kind: input, shape index: {}]   ;;  %s2703_s8 = inlined_call_operand.vmem [shape: f32[1,32], index: 8, kind: input, shape index: {}]   ;;  %s2704_s9 = inlined_call_operand.vmem [shape: f32[32,128], index: 9, kind: input, shape index: {}]   ;;  %s2705_s10 = inlined_call_operand.vmem [shape: f32[1,128], index: 10, kind: input, shape index: {}]   ;;  %s2706_s11 = inlined_call_operand.hbm [shape: f32[128,256], index: 11, kind: input, shape index: {}]   ;;  %s2707_s12 = inlined_call_operand.vmem [shape: f32[1,256], index: 12, kind: input, shape index: {}]   ;;  %s2708_s13 = inlined_call_operand.vmem [shape: f32[256,512], index: 13, kind: input, shape index: {}]   ;;  %s2709_s14 = inlined_call_operand.vmem [shape: f32[1,512], index: 14, kind: input, shape index: {}]   ;;  %s2710_s15 = inlined_call_operand.vmem [shape: f32[512,128], index: 15, kind: input, shape index: {}]   ;;  %s2711_s16 = inlined_call_operand.vmem [shape: f32[1,128], index: 16, kind: input, shape index: {}]   ;;  %s2712_s17 = inlined_call_operand.vmem [shape: f32[8,128], index: 17, kind: output, shape index: {}]  }
   0x1   :  { %2714 = sst [smem:[#allocation5_spill]] %s2695_s0 }
   0x2   :  { %2715 = sst [smem:[#allocation6_spill]] %s2696_s1 }
   0x3   :  { %22 = vsyncpa [#allocation3], 0  ;;  %s49_s26 = sshll.u32 %s2706_s11, 4  ;;  %s1261_s27 = smov [#allocation2]   ;;  %s50_s26 = int_to_ptr.hbm [resolvable:$true] %s49_s26 }
   0x4   :  { %s51_s28 = sshll.u32 %s1261_s27, 4  ;;  %s1262_s29 = smov 256   ;;  %s52_s28 = int_to_ptr.vmem [resolvable:$true] %s51_s28 }
   0x5   :  { %s1263_s0 = smov 16  }
   0x6   :  { %57 = dma.hbm_to_vmem [thread:$0]  %s50_s26, 4096, %s52_s28, [#allocation3], %s1262_s29, %s1262_s29, %s1263_s0  }
   0x7   :  { %1259 = dma.done.wait [#allocation3], 4096  }
   0x8   :  { %1260 = vsyncadd [#allocation3], 4294963200  ;;  %s2716_s19 = sld [smem:[#allocation6_spill]]  ;;  %vm659_vm0 = vcmask 261120  }
   0x9   :  { %s2717_s26 = sld [smem:[#allocation5_spill]] }
   0xe   :  { %v133_v0 = vld [vmem:[%s2716_s19 + $0x1e0] sm:$0xff]  ;;  %v134_v1 = vld [vmem:[%s2716_s19 + $0x1e8] sm:$0xff]  ;;  %v135_v2 = vld [vmem:[%s2716_s19 + $0x1f0] sm:$0xff] }
   0xf   :  { %147 = vmatpush.msra.mxu0 %v133_v0  ;;  %167 = vmatpush.msra.mxu1 %v134_v1  ;;  %v136_v3 = vld [vmem:[%s2716_s19 + $0x1f8] sm:$0xff]  ;;  %v129_v4 = vld [vmem:[%s2716_s19 + $0x1c0] sm:$0xff]  ;;  %v130_v5 = vld [vmem:[%s2716_s19 + $0x1c8] sm:$0xff] }
  0x10   :  { %187 = vmatpush.msra.mxu2 %v135_v2  ;;  %207 = vmatpush.msra.mxu3 %v136_v3  ;;  %v131_v6 = vld [vmem:[%s2716_s19 + $0x1d0] sm:$0xff]  ;;  %v132_v7 = vld [vmem:[%s2716_s19 + $0x1d8] sm:$0xff]  ;;  %v125_v8 = vld [vmem:[%s2716_s19 + $0x1a0] sm:$0xff] }
  0x11   :  { %148 = vmatpush.msra.mxu0 %v129_v4  ;;  %168 = vmatpush.msra.mxu1 %v130_v5  ;;  %v126_v9 = vld [vmem:[%s2716_s19 + $0x1a8] sm:$0xff]  ;;  %v127_v10 = vld [vmem:[%s2716_s19 + $0x1b0] sm:$0xff]  ;;  %v128_v11 = vld [vmem:[%s2716_s19 + $0x1b8] sm:$0xff] }
  0x12   :  { %188 = vmatpush.msra.mxu2 %v131_v6  ;;  %208 = vmatpush.msra.mxu3 %v132_v7  ;;  %v121_v12 = vld [vmem:[%s2716_s19 + $0x180] sm:$0xff]  ;;  %v122_v13 = vld [vmem:[%s2716_s19 + $0x188] sm:$0xff]  ;;  %v123_v14 = vld [vmem:[%s2716_s19 + $0x190] sm:$0xff] }
  0x13   :  { %149 = vmatpush.msra.mxu0 %v125_v8  ;;  %169 = vmatpush.msra.mxu1 %v126_v9  ;;  %v124_v15 = vld [vmem:[%s2716_s19 + $0x198] sm:$0xff]  ;;  %v117_v16 = vld [vmem:[%s2716_s19 + $0x160] sm:$0xff]  ;;  %v118_v17 = vld [vmem:[%s2716_s19 + $0x168] sm:$0xff] }
  0x14   :  { %189 = vmatpush.msra.mxu2 %v127_v10  ;;  %209 = vmatpush.msra.mxu3 %v128_v11  ;;  %v119_v18 = vld [vmem:[%s2716_s19 + $0x170] sm:$0xff]  ;;  %v120_v19 = vld [vmem:[%s2716_s19 + $0x178] sm:$0xff]  ;;  %v113_v20 = vld [vmem:[%s2716_s19 + $0x140] sm:$0xff] }
  0x15   :  { %150 = vmatpush.msra.mxu0 %v121_v12  ;;  %170 = vmatpush.msra.mxu1 %v122_v13  ;;  %v114_v21 = vld [vmem:[%s2716_s19 + $0x148] sm:$0xff]  ;;  %v115_v22 = vld [vmem:[%s2716_s19 + $0x150] sm:$0xff]  ;;  %v116_v23 = vld [vmem:[%s2716_s19 + $0x158] sm:$0xff] }
  0x16   :  { %190 = vmatpush.msra.mxu2 %v123_v14  ;;  %210 = vmatpush.msra.mxu3 %v124_v15  ;;  %v109_v24 = vld [vmem:[%s2716_s19 + $0x120] sm:$0xff]  ;;  %v110_v25 = vld [vmem:[%s2716_s19 + $0x128] sm:$0xff]  ;;  %v111_v26 = vld [vmem:[%s2716_s19 + $0x130] sm:$0xff] }
  0x17   :  { %151 = vmatpush.msra.mxu0 %v117_v16  ;;  %171 = vmatpush.msra.mxu1 %v118_v17  ;;  %v112_v27 = vld [vmem:[%s2716_s19 + $0x138] sm:$0xff]  ;;  %v105_v28 = vld [vmem:[%s2716_s19 + $0x100] sm:$0xff]  ;;  %v106_v29 = vld [vmem:[%s2716_s19 + $0x108] sm:$0xff] }
  0x18   :  { %191 = vmatpush.msra.mxu2 %v119_v18  ;;  %211 = vmatpush.msra.mxu3 %v120_v19  ;;  %v107_v30 = vld [vmem:[%s2716_s19 + $0x110] sm:$0xff]  ;;  %v108_v31 = vld [vmem:[%s2716_s19 + $0x118] sm:$0xff]  ;;  %v101_v32 = vld [vmem:[%s2716_s19 + $0xe0] sm:$0xff] }
  0x19   :  { %152 = vmatpush.msra.mxu0 %v113_v20  ;;  %172 = vmatpush.msra.mxu1 %v114_v21  ;;  %v102_v33 = vld [vmem:[%s2716_s19 + $0xe8] sm:$0xff]  ;;  %v103_v34 = vld [vmem:[%s2716_s19 + $0xf0] sm:$0xff]  ;;  %v104_v35 = vld [vmem:[%s2716_s19 + $0xf8] sm:$0xff] }
  0x1a   :  { %192 = vmatpush.msra.mxu2 %v115_v22  ;;  %212 = vmatpush.msra.mxu3 %v116_v23  ;;  %v97_v36 = vld [vmem:[%s2716_s19 + $0xc0] sm:$0xff]  ;;  %v98_v37 = vld [vmem:[%s2716_s19 + $0xc8] sm:$0xff]  ;;  %v99_v38 = vld [vmem:[%s2716_s19 + $0xd0] sm:$0xff] }
  0x1b   :  { %153 = vmatpush.msra.mxu0 %v109_v24  ;;  %173 = vmatpush.msra.mxu1 %v110_v25  ;;  %v100_v39 = vld [vmem:[%s2716_s19 + $0xd8] sm:$0xff]  ;;  %v93_v40 = vld [vmem:[%s2716_s19 + $0xa0] sm:$0xff]  ;;  %v94_v41 = vld [vmem:[%s2716_s19 + $0xa8] sm:$0xff] }
  0x1c   :  { %193 = vmatpush.msra.mxu2 %v111_v26  ;;  %213 = vmatpush.msra.mxu3 %v112_v27  ;;  %v95_v42 = vld [vmem:[%s2716_s19 + $0xb0] sm:$0xff]  ;;  %v96_v43 = vld [vmem:[%s2716_s19 + $0xb8] sm:$0xff]  ;;  %v89_v44 = vld [vmem:[%s2716_s19 + $0x80] sm:$0xff] }
  0x1d   :  { %154 = vmatpush.msra.mxu0 %v105_v28  ;;  %174 = vmatpush.msra.mxu1 %v106_v29  ;;  %v90_v45 = vld [vmem:[%s2716_s19 + $0x88] sm:$0xff]  ;;  %v91_v46 = vld [vmem:[%s2716_s19 + $0x90] sm:$0xff]  ;;  %v92_v47 = vld [vmem:[%s2716_s19 + $0x98] sm:$0xff] }
  0x1e   :  { %194 = vmatpush.msra.mxu2 %v107_v30  ;;  %214 = vmatpush.msra.mxu3 %v108_v31  ;;  %v85_v48 = vld [vmem:[%s2716_s19 + $0x60] sm:$0xff]  ;;  %v86_v49 = vld [vmem:[%s2716_s19 + $0x68] sm:$0xff]  ;;  %v87_v50 = vld [vmem:[%s2716_s19 + $0x70] sm:$0xff] }
  0x1f   :  { %155 = vmatpush.msra.mxu0 %v101_v32  ;;  %175 = vmatpush.msra.mxu1 %v102_v33  ;;  %v88_v51 = vld [vmem:[%s2716_s19 + $0x78] sm:$0xff]  ;;  %v81_v52 = vld [vmem:[%s2716_s19 + $0x40] sm:$0xff]  ;;  %v82_v53 = vld [vmem:[%s2716_s19 + $0x48] sm:$0xff] }
  0x20   :  { %195 = vmatpush.msra.mxu2 %v103_v34  ;;  %215 = vmatpush.msra.mxu3 %v104_v35  ;;  %v83_v54 = vld [vmem:[%s2716_s19 + $0x50] sm:$0xff]  ;;  %v84_v55 = vld [vmem:[%s2716_s19 + $0x58] sm:$0xff]  ;;  %v77_v56 = vld [vmem:[%s2716_s19 + $0x20] sm:$0xff] }
  0x21   :  { %156 = vmatpush.msra.mxu0 %v97_v36  ;;  %176 = vmatpush.msra.mxu1 %v98_v37  ;;  %v78_v57 = vld [vmem:[%s2716_s19 + $0x28] sm:$0xff]  ;;  %v79_v58 = vld [vmem:[%s2716_s19 + $0x30] sm:$0xff]  ;;  %v80_v59 = vld [vmem:[%s2716_s19 + $0x38] sm:$0xff] }
  0x22   :  { %196 = vmatpush.msra.mxu2 %v99_v38  ;;  %216 = vmatpush.msra.mxu3 %v100_v39  ;;  %v73_v60 = vld [vmem:[%s2716_s19] sm:$0xff]  ;;  %v74_v61 = vld [vmem:[%s2716_s19 + $0x8] sm:$0xff]  ;;  %v75_v62 = vld [vmem:[%s2716_s19 + $0x10] sm:$0xff] }
  0x23   :  { %157 = vmatpush.msra.mxu0 %v93_v40  ;;  %177 = vmatpush.msra.mxu1 %v94_v41  ;;  %v76_v63 = vld [vmem:[%s2716_s19 + $0x18] sm:$0xff]  ;;  %v72_v0 = vld [vmem:[%s2717_s26] sm:$0xff]  ;;  %v265_v1 = vld [vmem:[%s2698_s3 + $0xf0] sm:$0xff] }
  0x24   :  { %197 = vmatpush.msra.mxu2 %v95_v42  ;;  %217 = vmatpush.msra.mxu3 %v96_v43  ;;  %v297_v2 = vld [vmem:[%s2698_s3 + $0x1f0] sm:$0xff]  ;;  %v263_v5 = vld [vmem:[%s2698_s3 + $0xe0] sm:$0xff] }
  0x25   :  { %158 = vmatpush.msra.mxu0 %v89_v44  ;;  %178 = vmatpush.msra.mxu1 %v90_v45  ;;  %v329_v3 = vld [vmem:[%s2698_s3 + $0x2f0] sm:$0xff]  ;;  %v295_v6 = vld [vmem:[%s2698_s3 + $0x1e0] sm:$0xff] }
  0x26   :  { %198 = vmatpush.msra.mxu2 %v91_v46  ;;  %218 = vmatpush.msra.mxu3 %v92_v47  ;;  %v361_v4 = vld [vmem:[%s2698_s3 + $0x3f0] sm:$0xff]  ;;  %v327_v7 = vld [vmem:[%s2698_s3 + $0x2e0] sm:$0xff] }
  0x27   :  { %159 = vmatpush.msra.mxu0 %v85_v48  ;;  %179 = vmatpush.msra.mxu1 %v86_v49  ;;  %v359_v8 = vld [vmem:[%s2698_s3 + $0x3e0] sm:$0xff]  ;;  %v261_v9 = vld [vmem:[%s2698_s3 + $0xd0] sm:$0xff] }
  0x28   :  { %199 = vmatpush.msra.mxu2 %v87_v50  ;;  %219 = vmatpush.msra.mxu3 %v88_v51  ;;  %v293_v10 = vld [vmem:[%s2698_s3 + $0x1d0] sm:$0xff]  ;;  %v259_v13 = vld [vmem:[%s2698_s3 + $0xc0] sm:$0xff] }
  0x29   :  { %160 = vmatpush.msra.mxu0 %v81_v52  ;;  %180 = vmatpush.msra.mxu1 %v82_v53  ;;  %v325_v11 = vld [vmem:[%s2698_s3 + $0x2d0] sm:$0xff]  ;;  %v291_v14 = vld [vmem:[%s2698_s3 + $0x1c0] sm:$0xff] }
  0x2a   :  { %200 = vmatpush.msra.mxu2 %v83_v54  ;;  %220 = vmatpush.msra.mxu3 %v84_v55  ;;  %v357_v12 = vld [vmem:[%s2698_s3 + $0x3d0] sm:$0xff]  ;;  %v323_v15 = vld [vmem:[%s2698_s3 + $0x2c0] sm:$0xff] }
  0x2b   :  { %161 = vmatpush.msra.mxu0 %v77_v56  ;;  %181 = vmatpush.msra.mxu1 %v78_v57  ;;  %v355_v16 = vld [vmem:[%s2698_s3 + $0x3c0] sm:$0xff]  ;;  %v257_v17 = vld [vmem:[%s2698_s3 + $0xb0] sm:$0xff] }
  0x2c   :  { %201 = vmatpush.msra.mxu2 %v79_v58  ;;  %221 = vmatpush.msra.mxu3 %v80_v59  ;;  %v289_v18 = vld [vmem:[%s2698_s3 + $0x1b0] sm:$0xff]  ;;  %v255_v21 = vld [vmem:[%s2698_s3 + $0xa0] sm:$0xff] }
  0x2d   :  { %162 = vmatpush.msra.mxu0 %v73_v60  ;;  %182 = vmatpush.msra.mxu1 %v74_v61  ;;  %v321_v19 = vld [vmem:[%s2698_s3 + $0x2b0] sm:$0xff]  ;;  %v287_v22 = vld [vmem:[%s2698_s3 + $0x1a0] sm:$0xff] }
  0x2e   :  { %202 = vmatpush.msra.mxu2 %v75_v62  ;;  %222 = vmatpush.msra.mxu3 %v76_v63  ;;  %v353_v20 = vld [vmem:[%s2698_s3 + $0x3b0] sm:$0xff]  ;;  %v319_v23 = vld [vmem:[%s2698_s3 + $0x2a0] sm:$0xff]  ;;  %v266_v63 = vld [vmem:[%s2698_s3 + $0xf8] sm:$0xff] }
  0x2f   :  { %163 = vmatmul.f32.vlgmr.msra.gmra.mxu0 %v72_v0  ;;  %183 = vmatmul.f32.vlgmr.msra.gmra.mxu1 %v72_v0  ;;  %v351_v24 = vld [vmem:[%s2698_s3 + $0x3a0] sm:$0xff]  ;;  %v253_v25 = vld [vmem:[%s2698_s3 + $0x90] sm:$0xff] }
  0x30   :  { %203 = vmatmul.f32.vlgmr.msra.gmra.mxu2 %v72_v0  ;;  %223 = vmatmul.f32.vlgmr.msra.gmra.mxu3 %v72_v0  ;;  %v285_v26 = vld [vmem:[%s2698_s3 + $0x190] sm:$0xff]  ;;  %v251_v29 = vld [vmem:[%s2698_s3 + $0x80] sm:$0xff]  ;;  %v298_v0 = vld [vmem:[%s2698_s3 + $0x1f8] sm:$0xff] }
  0x31   :  { %369 = vmatpush.msrb.mxu0 %v265_v1  ;;  %389 = vmatpush.msrb.mxu1 %v297_v2  ;;  %v317_v27 = vld [vmem:[%s2698_s3 + $0x290] sm:$0xff]  ;;  %v283_v30 = vld [vmem:[%s2698_s3 + $0x180] sm:$0xff] }
  0x32   :  { %409 = vmatpush.msrb.mxu2 %v329_v3  ;;  %429 = vmatpush.msrb.mxu3 %v361_v4  ;;  %v349_v28 = vld [vmem:[%s2698_s3 + $0x390] sm:$0xff]  ;;  %v315_v31 = vld [vmem:[%s2698_s3 + $0x280] sm:$0xff]  ;;  %v264_v3 = vld [vmem:[%s2698_s3 + $0xe8] sm:$0xff] }
  0x33   :  { %370 = vmatpush.msrb.mxu0 %v263_v5  ;;  %390 = vmatpush.msrb.mxu1 %v295_v6  ;;  %v347_v32 = vld [vmem:[%s2698_s3 + $0x380] sm:$0xff]  ;;  %v249_v33 = vld [vmem:[%s2698_s3 + $0x70] sm:$0xff]  ;;  %v296_v4 = vld [vmem:[%s2698_s3 + $0x1e8] sm:$0xff] }
  0x34   :  { %410 = vmatpush.msrb.mxu2 %v327_v7  ;;  %430 = vmatpush.msrb.mxu3 %v359_v8  ;;  %v281_v34 = vld [vmem:[%s2698_s3 + $0x170] sm:$0xff]  ;;  %v247_v37 = vld [vmem:[%s2698_s3 + $0x60] sm:$0xff]  ;;  %v330_v5 = vld [vmem:[%s2698_s3 + $0x2f8] sm:$0xff] }
  0x35   :  { %371 = vmatpush.msrb.mxu0 %v261_v9  ;;  %391 = vmatpush.msrb.mxu1 %v293_v10  ;;  %v313_v35 = vld [vmem:[%s2698_s3 + $0x270] sm:$0xff]  ;;  %v279_v38 = vld [vmem:[%s2698_s3 + $0x160] sm:$0xff]  ;;  %v362_v6 = vld [vmem:[%s2698_s3 + $0x3f8] sm:$0xff] }
  0x36   :  { %411 = vmatpush.msrb.mxu2 %v325_v11  ;;  %431 = vmatpush.msrb.mxu3 %v357_v12  ;;  %v345_v36 = vld [vmem:[%s2698_s3 + $0x370] sm:$0xff]  ;;  %v311_v41 = vld [vmem:[%s2698_s3 + $0x260] sm:$0xff]  ;;  %v262_v7 = vld [vmem:[%s2698_s3 + $0xd8] sm:$0xff] }
  0x37   :  { %372 = vmatpush.msrb.mxu0 %v259_v13  ;;  %392 = vmatpush.msrb.mxu1 %v291_v14  ;;  %v245_v39 = vld [vmem:[%s2698_s3 + $0x50] sm:$0xff]  ;;  %v343_v42 = vld [vmem:[%s2698_s3 + $0x360] sm:$0xff]  ;;  %v294_v8 = vld [vmem:[%s2698_s3 + $0x1d8] sm:$0xff] }
  0x38   :  { %412 = vmatpush.msrb.mxu2 %v323_v15  ;;  %432 = vmatpush.msrb.mxu3 %v355_v16  ;;  %v277_v40 = vld [vmem:[%s2698_s3 + $0x150] sm:$0xff]  ;;  %v243_v45 = vld [vmem:[%s2698_s3 + $0x40] sm:$0xff]  ;;  %v328_v9 = vld [vmem:[%s2698_s3 + $0x2e8] sm:$0xff] }
  0x39   :  { %373 = vmatpush.msrb.mxu0 %v257_v17  ;;  %393 = vmatpush.msrb.mxu1 %v289_v18  ;;  %v309_v43 = vld [vmem:[%s2698_s3 + $0x250] sm:$0xff]  ;;  %v275_v46 = vld [vmem:[%s2698_s3 + $0x140] sm:$0xff]  ;;  %v360_v10 = vld [vmem:[%s2698_s3 + $0x3e8] sm:$0xff] }
  0x3a   :  { %413 = vmatpush.msrb.mxu2 %v321_v19  ;;  %433 = vmatpush.msrb.mxu3 %v353_v20  ;;  %v341_v44 = vld [vmem:[%s2698_s3 + $0x350] sm:$0xff]  ;;  %v307_v47 = vld [vmem:[%s2698_s3 + $0x240] sm:$0xff]  ;;  %v260_v11 = vld [vmem:[%s2698_s3 + $0xc8] sm:$0xff] }
  0x3b   :  { %374 = vmatpush.msrb.mxu0 %v255_v21  ;;  %394 = vmatpush.msrb.mxu1 %v287_v22  ;;  %v339_v48 = vld [vmem:[%s2698_s3 + $0x340] sm:$0xff]  ;;  %v241_v49 = vld [vmem:[%s2698_s3 + $0x30] sm:$0xff]  ;;  %v292_v12 = vld [vmem:[%s2698_s3 + $0x1c8] sm:$0xff] }
  0x3c   :  { %414 = vmatpush.msrb.mxu2 %v319_v23  ;;  %434 = vmatpush.msrb.mxu3 %v351_v24  ;;  %v273_v50 = vld [vmem:[%s2698_s3 + $0x130] sm:$0xff]  ;;  %v239_v53 = vld [vmem:[%s2698_s3 + $0x20] sm:$0xff]  ;;  %v326_v13 = vld [vmem:[%s2698_s3 + $0x2d8] sm:$0xff] }
  0x3d   :  { %375 = vmatpush.msrb.mxu0 %v253_v25  ;;  %395 = vmatpush.msrb.mxu1 %v285_v26  ;;  %v305_v51 = vld [vmem:[%s2698_s3 + $0x230] sm:$0xff]  ;;  %v271_v54 = vld [vmem:[%s2698_s3 + $0x120] sm:$0xff]  ;;  %v358_v14 = vld [vmem:[%s2698_s3 + $0x3d8] sm:$0xff] }
  0x3e   :  { %415 = vmatpush.msrb.mxu2 %v317_v27  ;;  %435 = vmatpush.msrb.mxu3 %v349_v28  ;;  %v337_v52 = vld [vmem:[%s2698_s3 + $0x330] sm:$0xff]  ;;  %v303_v55 = vld [vmem:[%s2698_s3 + $0x220] sm:$0xff]  ;;  %v258_v15 = vld [vmem:[%s2698_s3 + $0xb8] sm:$0xff] }
  0x3f   :  { %376 = vmatpush.msrb.mxu0 %v251_v29  ;;  %396 = vmatpush.msrb.mxu1 %v283_v30  ;;  %v335_v56 = vld [vmem:[%s2698_s3 + $0x320] sm:$0xff]  ;;  %v237_v57 = vld [vmem:[%s2698_s3 + $0x10] sm:$0xff]  ;;  %v290_v16 = vld [vmem:[%s2698_s3 + $0x1b8] sm:$0xff] }
  0x40   :  { %416 = vmatpush.msrb.mxu2 %v315_v31  ;;  %436 = vmatpush.msrb.mxu3 %v347_v32  ;;  %v269_v58 = vld [vmem:[%s2698_s3 + $0x110] sm:$0xff]  ;;  %v235_v61 = vld [vmem:[%s2698_s3] sm:$0xff]  ;;  %v324_v17 = vld [vmem:[%s2698_s3 + $0x2c8] sm:$0xff] }
  0x41   :  { %377 = vmatpush.msrb.mxu0 %v249_v33  ;;  %397 = vmatpush.msrb.mxu1 %v281_v34  ;;  %v301_v59 = vld [vmem:[%s2698_s3 + $0x210] sm:$0xff]  ;;  %v267_v62 = vld [vmem:[%s2698_s3 + $0x100] sm:$0xff]  ;;  %v356_v18 = vld [vmem:[%s2698_s3 + $0x3c8] sm:$0xff] }
  0x42   :  { %417 = vmatpush.msrb.mxu2 %v313_v35  ;;  %437 = vmatpush.msrb.mxu3 %v345_v36  ;;  %v333_v60 = vld [vmem:[%s2698_s3 + $0x310] sm:$0xff]  ;;  %v299_v1 = vld [vmem:[%s2698_s3 + $0x200] sm:$0xff]  ;;  %v256_v19 = vld [vmem:[%s2698_s3 + $0xa8] sm:$0xff] }
  0x43   :  { %378 = vmatpush.msrb.mxu0 %v247_v37  ;;  %398 = vmatpush.msrb.mxu1 %v279_v38  ;;  %v331_v2 = vld [vmem:[%s2698_s3 + $0x300] sm:$0xff]  ;;  %v288_v20 = vld [vmem:[%s2698_s3 + $0x1a8] sm:$0xff]  ;;  %v322_v21 = vld [vmem:[%s2698_s3 + $0x2b8] sm:$0xff] }
  0x44   :  { %418 = vmatpush.msrb.mxu2 %v311_v41  ;;  %438 = vmatpush.msrb.mxu3 %v343_v42  ;;  %v354_v22 = vld [vmem:[%s2698_s3 + $0x3b8] sm:$0xff]  ;;  %v252_v25 = vld [vmem:[%s2698_s3 + $0x88] sm:$0xff] }
  0x45   :  { %379 = vmatpush.msrb.mxu0 %v245_v39  ;;  %399 = vmatpush.msrb.mxu1 %v277_v40  ;;  %v254_v23 = vld [vmem:[%s2698_s3 + $0x98] sm:$0xff]  ;;  %v284_v26 = vld [vmem:[%s2698_s3 + $0x188] sm:$0xff] }
  0x46   :  { %419 = vmatpush.msrb.mxu2 %v309_v43  ;;  %439 = vmatpush.msrb.mxu3 %v341_v44  ;;  %v286_v24 = vld [vmem:[%s2698_s3 + $0x198] sm:$0xff]  ;;  %v320_v29 = vld [vmem:[%s2698_s3 + $0x2a8] sm:$0xff] }
  0x47   :  { %380 = vmatpush.msrb.mxu0 %v243_v45  ;;  %400 = vmatpush.msrb.mxu1 %v275_v46  ;;  %v250_v27 = vld [vmem:[%s2698_s3 + $0x78] sm:$0xff]  ;;  %v352_v30 = vld [vmem:[%s2698_s3 + $0x3a8] sm:$0xff] }
  0x48   :  { %420 = vmatpush.msrb.mxu2 %v307_v47  ;;  %440 = vmatpush.msrb.mxu3 %v339_v48  ;;  %v282_v28 = vld [vmem:[%s2698_s3 + $0x178] sm:$0xff]  ;;  %v248_v31 = vld [vmem:[%s2698_s3 + $0x68] sm:$0xff] }
  0x49   :  { %381 = vmatpush.msrb.mxu0 %v241_v49  ;;  %401 = vmatpush.msrb.mxu1 %v273_v50  ;;  %v280_v32 = vld [vmem:[%s2698_s3 + $0x168] sm:$0xff]  ;;  %v318_v33 = vld [vmem:[%s2698_s3 + $0x298] sm:$0xff] }
  0x4a   :  { %421 = vmatpush.msrb.mxu2 %v305_v51  ;;  %441 = vmatpush.msrb.mxu3 %v337_v52  ;;  %v350_v34 = vld [vmem:[%s2698_s3 + $0x398] sm:$0xff]  ;;  %v316_v37 = vld [vmem:[%s2698_s3 + $0x288] sm:$0xff] }
  0x4b   :  { %382 = vmatpush.msrb.mxu0 %v239_v53  ;;  %402 = vmatpush.msrb.mxu1 %v271_v54  ;;  %v246_v35 = vld [vmem:[%s2698_s3 + $0x58] sm:$0xff]  ;;  %v348_v38 = vld [vmem:[%s2698_s3 + $0x388] sm:$0xff] }
  0x4c   :  { %422 = vmatpush.msrb.mxu2 %v303_v55  ;;  %442 = vmatpush.msrb.mxu3 %v335_v56  ;;  %v278_v36 = vld [vmem:[%s2698_s3 + $0x158] sm:$0xff]  ;;  %v244_v39 = vld [vmem:[%s2698_s3 + $0x48] sm:$0xff] }
  0x4d   :  { %383 = vmatpush.msrb.mxu0 %v237_v57  ;;  %403 = vmatpush.msrb.mxu1 %v269_v58  ;;  %v276_v40 = vld [vmem:[%s2698_s3 + $0x148] sm:$0xff]  ;;  %v314_v41 = vld [vmem:[%s2698_s3 + $0x278] sm:$0xff] }
  0x4e   :  { %423 = vmatpush.msrb.mxu2 %v301_v59  ;;  %443 = vmatpush.msrb.mxu3 %v333_v60  ;;  %v346_v42 = vld [vmem:[%s2698_s3 + $0x378] sm:$0xff]  ;;  %v312_v45 = vld [vmem:[%s2698_s3 + $0x268] sm:$0xff] }
  0x4f   :  { %384 = vmatpush.msrb.mxu0 %v235_v61  ;;  %404 = vmatpush.msrb.mxu1 %v267_v62  ;;  %v242_v43 = vld [vmem:[%s2698_s3 + $0x38] sm:$0xff]  ;;  %v344_v46 = vld [vmem:[%s2698_s3 + $0x368] sm:$0xff] }
  0x50   :  { %424 = vmatpush.msrb.mxu2 %v299_v1  ;;  %444 = vmatpush.msrb.mxu3 %v331_v2  ;;  %v274_v44 = vld [vmem:[%s2698_s3 + $0x138] sm:$0xff]  ;;  %v240_v47 = vld [vmem:[%s2698_s3 + $0x28] sm:$0xff]  ;;  %v137_v1 = vld [vmem:[%s2697_s2] sm:$0xf] }
  0x51   :  { %449 = vmatpush.msra.mxu0 %v266_v63  ;;  %469 = vmatpush.msra.mxu1 %v298_v0  ;;  %v272_v48 = vld [vmem:[%s2698_s3 + $0x128] sm:$0xff]  ;;  %v310_v49 = vld [vmem:[%s2698_s3 + $0x258] sm:$0xff]  ;;  %v139_v2 = vperm.slane %v137_v1, 0 }
  0x52   :  { %489 = vmatpush.msra.mxu2 %v330_v5  ;;  %509 = vmatpush.msra.mxu3 %v362_v6  ;;  %v342_v50 = vld [vmem:[%s2698_s3 + $0x358] sm:$0xff]  ;;  %v308_v53 = vld [vmem:[%s2698_s3 + $0x248] sm:$0xff] }
  0x53   :  { %450 = vmatpush.msra.mxu0 %v264_v3  ;;  %470 = vmatpush.msra.mxu1 %v296_v4  ;;  %v238_v51 = vld [vmem:[%s2698_s3 + $0x18] sm:$0xff]  ;;  %v340_v54 = vld [vmem:[%s2698_s3 + $0x348] sm:$0xff]  ;;  %v140_v3 = vperm.slane %v137_v1, 1 }
  0x54   :  { %490 = vmatpush.msra.mxu2 %v328_v9  ;;  %510 = vmatpush.msra.mxu3 %v360_v10  ;;  %v270_v52 = vld [vmem:[%s2698_s3 + $0x118] sm:$0xff]  ;;  %v236_v55 = vld [vmem:[%s2698_s3 + $0x8] sm:$0xff]  ;;  %v141_v10 = vperm.slane %v137_v1, 2 }
  0x55   :  { %451 = vmatpush.msra.mxu0 %v262_v7  ;;  %471 = vmatpush.msra.mxu1 %v294_v8  ;;  %v268_v56 = vld [vmem:[%s2698_s3 + $0x108] sm:$0xff]  ;;  %v306_v57 = vld [vmem:[%s2698_s3 + $0x238] sm:$0xff] }
  0x56   :  { %491 = vmatpush.msra.mxu2 %v326_v13  ;;  %511 = vmatpush.msra.mxu3 %v358_v14  ;;  %v338_v58 = vld [vmem:[%s2698_s3 + $0x338] sm:$0xff]  ;;  %v304_v59 = vld [vmem:[%s2698_s3 + $0x228] sm:$0xff] }
  0x57   :  { %452 = vmatpush.msra.mxu0 %v260_v11  ;;  %472 = vmatpush.msra.mxu1 %v292_v12  ;;  %v336_v60 = vld [vmem:[%s2698_s3 + $0x328] sm:$0xff]  ;;  %v302_v61 = vld [vmem:[%s2698_s3 + $0x218] sm:$0xff]  ;;  %v142_v11 = vperm.slane %v137_v1, 3 }
  0x58   :  { %492 = vmatpush.msra.mxu2 %v324_v17  ;;  %512 = vmatpush.msra.mxu3 %v356_v18  ;;  %v334_v62 = vld [vmem:[%s2698_s3 + $0x318] sm:$0xff]  ;;  %v300_v63 = vld [vmem:[%s2698_s3 + $0x208] sm:$0xff]  ;;  %v547_v18 = vld [vmem:[%s2700_s5 + $0x70] sm:$0xff] }
  0x59   :  { %453 = vmatpush.msra.mxu0 %v258_v15  ;;  %473 = vmatpush.msra.mxu1 %v290_v16  ;;  %v332_v0 = vld [vmem:[%s2698_s3 + $0x308] sm:$0xff]  ;;  %v548_v14 = vld [vmem:[%s2700_s5 + $0x78] sm:$0xff] }
  0x5a   :  { %493 = vmatpush.msra.mxu2 %v322_v21  ;;  %513 = vmatpush.msra.mxu3 %v354_v22  ;;  %v564_v15 = vld [vmem:[%s2700_s5 + $0xf8] sm:$0xff]  ;;  %v546_v21 = vld [vmem:[%s2700_s5 + $0x68] sm:$0xff] }
  0x5b   :  { %454 = vmatpush.msra.mxu0 %v256_v19  ;;  %474 = vmatpush.msra.mxu1 %v288_v20 }
  0x5c   :  { %494 = vmatpush.msra.mxu2 %v320_v29  ;;  %514 = vmatpush.msra.mxu3 %v352_v30  ;;  %v563_v29 = vld [vmem:[%s2700_s5 + $0xf0] sm:$0xff]  ;;  %v542_v30 = vld [vmem:[%s2700_s5 + $0x48] sm:$0xff] }
  0x5d   :  { %455 = vmatpush.msra.mxu0 %v254_v23  ;;  %475 = vmatpush.msra.mxu1 %v286_v24 }
  0x5e   :  { %495 = vmatpush.msra.mxu2 %v318_v33  ;;  %515 = vmatpush.msra.mxu3 %v350_v34  ;;  %v561_v33 = vld [vmem:[%s2700_s5 + $0xe0] sm:$0xff]  ;;  %v540_v34 = vld [vmem:[%s2700_s5 + $0x38] sm:$0xff] }
  0x5f   :  { %456 = vmatpush.msra.mxu0 %v252_v25  ;;  %476 = vmatpush.msra.mxu1 %v284_v26  ;;  %v545_v26 = vld [vmem:[%s2700_s5 + $0x60] sm:$0xff] }
  0x60   :  { %496 = vmatpush.msra.mxu2 %v316_v37  ;;  %516 = vmatpush.msra.mxu3 %v348_v38  ;;  %v559_v37 = vld [vmem:[%s2700_s5 + $0xd0] sm:$0xff]  ;;  %v538_v38 = vld [vmem:[%s2700_s5 + $0x28] sm:$0xff] }
  0x61   :  { %457 = vmatpush.msra.mxu0 %v250_v27  ;;  %477 = vmatpush.msra.mxu1 %v282_v28  ;;  %v544_v27 = vld [vmem:[%s2700_s5 + $0x58] sm:$0xff]  ;;  %v543_v28 = vld [vmem:[%s2700_s5 + $0x50] sm:$0xff] }
  0x62   :  { %497 = vmatpush.msra.mxu2 %v314_v41  ;;  %517 = vmatpush.msra.mxu3 %v346_v42  ;;  %v557_v41 = vld [vmem:[%s2700_s5 + $0xc0] sm:$0xff]  ;;  %v536_v42 = vld [vmem:[%s2700_s5 + $0x18] sm:$0xff] }
  0x63   :  { %458 = vmatpush.msra.mxu0 %v248_v31  ;;  %478 = vmatpush.msra.mxu1 %v280_v32  ;;  %v562_v31 = vld [vmem:[%s2700_s5 + $0xe8] sm:$0xff]  ;;  %v541_v32 = vld [vmem:[%s2700_s5 + $0x40] sm:$0xff] }
  0x64   :  { %498 = vmatpush.msra.mxu2 %v312_v45  ;;  %518 = vmatpush.msra.mxu3 %v344_v46  ;;  %v555_v45 = vld [vmem:[%s2700_s5 + $0xb0] sm:$0xff]  ;;  %v534_v46 = vld [vmem:[%s2700_s5 + $0x8] sm:$0xff] }
  0x65   :  { %459 = vmatpush.msra.mxu0 %v246_v35  ;;  %479 = vmatpush.msra.mxu1 %v278_v36  ;;  %v560_v35 = vld [vmem:[%s2700_s5 + $0xd8] sm:$0xff]  ;;  %v539_v36 = vld [vmem:[%s2700_s5 + $0x30] sm:$0xff] }
  0x66   :  { %499 = vmatpush.msra.mxu2 %v310_v49  ;;  %519 = vmatpush.msra.mxu3 %v342_v50  ;;  %v553_v49 = vld [vmem:[%s2700_s5 + $0xa0] sm:$0xff]  ;;  %v552_v50 = vld [vmem:[%s2700_s5 + $0x98] sm:$0xff] }
  0x67   :  { %460 = vmatpush.msra.mxu0 %v244_v39  ;;  %480 = vmatpush.msra.mxu1 %v276_v40  ;;  %v558_v39 = vld [vmem:[%s2700_s5 + $0xc8] sm:$0xff]  ;;  %v537_v40 = vld [vmem:[%s2700_s5 + $0x20] sm:$0xff] }
  0x68   :  { %500 = vmatpush.msra.mxu2 %v308_v53  ;;  %520 = vmatpush.msra.mxu3 %v340_v54  ;;  %v549_v53 = vld [vmem:[%s2700_s5 + $0x80] sm:$0xff]  ;;  %v626_v54 = vld [vmem:[%s2702_s7 + $0x78] sm:$0xff] }
  0x69   :  { %461 = vmatpush.msra.mxu0 %v242_v43  ;;  %481 = vmatpush.msra.mxu1 %v274_v44  ;;  %v556_v43 = vld [vmem:[%s2700_s5 + $0xb8] sm:$0xff]  ;;  %v535_v44 = vld [vmem:[%s2700_s5 + $0x10] sm:$0xff] }
  0x6a   :  { %501 = vmatpush.msra.mxu2 %v306_v57  ;;  %521 = vmatpush.msra.mxu3 %v338_v58  ;;  %v363_v57 = vld [vmem:[%s2699_s4] sm:$0x3] }
  0x6b   :  { %462 = vmatpush.msra.mxu0 %v240_v47  ;;  %482 = vmatpush.msra.mxu1 %v272_v48  ;;  %v554_v47 = vld [vmem:[%s2700_s5 + $0xa8] sm:$0xff]  ;;  %v533_v48 = vld [vmem:[%s2700_s5] sm:$0xff] }
  0x6c   :  { %502 = vmatpush.msra.mxu2 %v304_v59  ;;  %522 = vmatpush.msra.mxu3 %v336_v60  ;;  %v623_v59 = vld [vmem:[%s2702_s7 + $0x60] sm:$0xff]  ;;  %v365_v60 = vperm.slane %v363_v57, 0 }
  0x6d   :  { %463 = vmatpush.msra.mxu0 %v238_v51  ;;  %483 = vmatpush.msra.mxu1 %v270_v52  ;;  %v551_v51 = vld [vmem:[%s2700_s5 + $0x90] sm:$0xff]  ;;  %v550_v52 = vld [vmem:[%s2700_s5 + $0x88] sm:$0xff] }
  0x6e   :  { %503 = vmatpush.msra.mxu2 %v302_v61  ;;  %523 = vmatpush.msra.mxu3 %v334_v62  ;;  %v622_v61 = vld [vmem:[%s2702_s7 + $0x58] sm:$0xff]  ;;  %v621_v62 = vld [vmem:[%s2702_s7 + $0x50] sm:$0xff] }
  0x6f   :  { %464 = vmatpush.msra.mxu0 %v236_v55  ;;  %484 = vmatpush.msra.mxu1 %v268_v56  ;;  %v625_v55 = vld [vmem:[%s2702_s7 + $0x70] sm:$0xff]  ;;  %v624_v56 = vld [vmem:[%s2702_s7 + $0x68] sm:$0xff] }
  0x70   :  { %504 = vmatpush.msra.mxu2 %v300_v63  ;;  %524 = vmatpush.msra.mxu3 %v332_v0  ;;  %v620_v0 = vld [vmem:[%s2702_s7 + $0x48] sm:$0xff] }
  0xac   :  { %v164_v4 = vpop.f32.mrf.mxu0  ;;  %v184_v5 = vpop.f32.mrf.mxu1 }
  0xad   :  { %v165_v6 = vadd.f32 %v164_v4, %v139_v2  ;;  %v185_v7 = vadd.f32 %v184_v5, %v140_v3  ;;  %v619_v2 = vld [vmem:[%s2702_s7 + $0x40] sm:$0xff]  ;;  %v366_v4 = vperm.slane %v363_v57, 1  ;;  %v700_v57 = vld [vmem:[#allocation2 + $0x78] sm:$0xff] }
  0xaf   :  { %v227_v8 = vmul.f32 0.01, %v165_v6  ;;  %v228_v9 = vmul.f32 0.01, %v185_v7 }
  0xb1   :  { %v231_v12 = vmax.f32 %v165_v6, %v227_v8  ;;  %v232_v13 = vmax.f32 %v185_v7, %v228_v9 }
  0xb3   :  { %v204_v16 = vpop.f32.mrf.mxu2  ;;  %v224_v17 = vpop.f32.mrf.mxu3  ;;  %385 = vmatmul.f32.vlgmr.msrb.gmra.mxu0 %v231_v12  ;;  %405 = vmatmul.f32.vlgmr.msrb.gmra.mxu1 %v232_v13 }
  0xb4   :  { %v205_v19 = vadd.f32 %v204_v16, %v141_v10  ;;  %v225_v20 = vadd.f32 %v224_v17, %v142_v11  ;;  %569 = vmatpush.msrb.mxu0 %v548_v14  ;;  %589 = vmatpush.msrb.mxu1 %v564_v15 }
  0xb6   :  { %v229_v22 = vmul.f32 0.01, %v205_v19  ;;  %v230_v23 = vmul.f32 0.01, %v225_v20  ;;  %570 = vmatpush.msrb.mxu0 %v547_v18  ;;  %590 = vmatpush.msrb.mxu1 %v563_v29  ;;  %v654_v29 = vld [vmem:[%s2704_s9 + $0x18] sm:$0xff] }
  0xb8   :  { %v233_v24 = vmax.f32 %v205_v19, %v229_v22  ;;  %v234_v25 = vmax.f32 %v225_v20, %v230_v23  ;;  %571 = vmatpush.msrb.mxu0 %v546_v21  ;;  %591 = vmatpush.msrb.mxu1 %v562_v31  ;;  %v618_v21 = vld [vmem:[%s2702_s7 + $0x38] sm:$0xff]  ;;  %v617_v22 = vld [vmem:[%s2702_s7 + $0x30] sm:$0xff]  ;;  %v616_v23 = vld [vmem:[%s2702_s7 + $0x28] sm:$0xff] }
  0xb9   :  { %v652_v31 = vld [vmem:[%s2704_s9 + $0x8] sm:$0xff] }
  0xba   :  { %425 = vmatmul.f32.vlgmr.msrb.gmra.mxu2 %v233_v24  ;;  %445 = vmatmul.f32.vlgmr.msrb.gmra.mxu3 %v234_v25 }
  0xbb   :  { %465 = vmatmul.f32.vlgmr.msra.gmra.mxu0 %v231_v12  ;;  %485 = vmatmul.f32.vlgmr.msra.gmra.mxu1 %v232_v13 }
  0xbc   :  { %572 = vmatpush.msrb.mxu0 %v545_v26  ;;  %592 = vmatpush.msrb.mxu1 %v561_v33  ;;  %v613_v26 = vld [vmem:[%s2702_s7 + $0x10] sm:$0xff] }
  0xbd   :  { %631 = vmatpush.msrb.mxu2 %v626_v54  ;;  %675 = vmatpush.msrb.mxu3 %v654_v29  ;;  %v701_v54 = vld [vmem:[#allocation2 + $0x80] sm:$0xff] }
  0xbe   :  { %573 = vmatpush.msrb.mxu0 %v544_v27  ;;  %593 = vmatpush.msrb.mxu1 %v560_v35  ;;  %v612_v27 = vld [vmem:[%s2702_s7 + $0x8] sm:$0xff]  ;;  %v871_v29 = vld [vmem:[%s2708_s13 + $0x340] sm:$0xff] }
  0xbf   :  { %632 = vmatpush.msrb.mxu2 %v625_v55  ;;  %v702_v55 = vld [vmem:[#allocation2 + $0x88] sm:$0xff] }
  0xc0   :  { %574 = vmatpush.msrb.mxu0 %v543_v28  ;;  %594 = vmatpush.msrb.mxu1 %v559_v37  ;;  %v611_v28 = vld [vmem:[%s2702_s7] sm:$0xff] }
  0xc1   :  { %633 = vmatpush.msrb.mxu2 %v624_v56  ;;  %v699_v56 = vld [vmem:[#allocation2 + $0x70] sm:$0xff] }
  0xc2   :  { %505 = vmatmul.f32.vlgmr.msra.gmra.mxu2 %v233_v24  ;;  %525 = vmatmul.f32.vlgmr.msra.gmra.mxu3 %v234_v25  ;;  %v615_v24 = vld [vmem:[%s2702_s7 + $0x20] sm:$0xff]  ;;  %v614_v25 = vld [vmem:[%s2702_s7 + $0x18] sm:$0xff] }
  0xc3   :  { %575 = vmatpush.msrb.mxu0 %v542_v30  ;;  %595 = vmatpush.msrb.mxu1 %v558_v39  ;;  %v653_v30 = vld [vmem:[%s2704_s9 + $0x10] sm:$0xff]  ;;  %v651_v39 = vld [vmem:[%s2704_s9] sm:$0xff] }
  0xc4   :  { %634 = vmatpush.msrb.mxu2 %v623_v59  ;;  %676 = vmatpush.msrb.mxu3 %v653_v30  ;;  %v698_v59 = vld [vmem:[#allocation2 + $0x68] sm:$0xff] }
  0xc5   :  { %576 = vmatpush.msrb.mxu0 %v541_v32  ;;  %596 = vmatpush.msrb.mxu1 %v557_v41  ;;  %v1231_v32 = vld [vmem:[%s2701_s6] ss:$0 sm:$0xff]  ;;  %v716_v41 = vld [vmem:[#allocation2 + $0xf8] sm:$0xff]  ;;  %v872_v30 = vld [vmem:[%s2708_s13 + $0x348] sm:$0xff] }
  0xc6   :  { %635 = vmatpush.msrb.mxu2 %v622_v61  ;;  %677 = vmatpush.msrb.mxu3 %v652_v31  ;;  %v696_v61 = vld [vmem:[#allocation2 + $0x58] sm:$0xff]  ;;  %v811_v31 = vld [vmem:[%s2708_s13 + $0x160] sm:$0xff] }
  0xc7   :  { %577 = vmatpush.msrb.mxu0 %v540_v34  ;;  %597 = vmatpush.msrb.mxu1 %v556_v43  ;;  %v714_v43 = vld [vmem:[#allocation2 + $0xe8] sm:$0xff] }
  0xc8   :  { %636 = vmatpush.msrb.mxu2 %v621_v62  ;;  %678 = vmatpush.msrb.mxu3 %v651_v39  ;;  %v693_v62 = vld [vmem:[#allocation2 + $0x40] sm:$0xff] }
  0xc9   :  { %578 = vmatpush.msrb.mxu0 %v539_v36  ;;  %598 = vmatpush.msrb.mxu1 %v555_v45  ;;  %v712_v45 = vld [vmem:[#allocation2 + $0xd8] sm:$0xff]  ;;  %v803_v39 = vld [vmem:[%s2708_s13 + $0x120] sm:$0xff] }
  0xca   :  { %637 = vmatpush.msrb.mxu2 %v620_v0  ;;  %v1232_v0 = vld [vmem:[%s2703_s8] ss:$0 sm:$0xff] }
  0xcb   :  { %579 = vmatpush.msrb.mxu0 %v538_v38  ;;  %599 = vmatpush.msrb.mxu1 %v554_v47  ;;  %v710_v47 = vld [vmem:[#allocation2 + $0xc8] sm:$0xff] }
  0xcc   :  { %638 = vmatpush.msrb.mxu2 %v619_v2 }
  0xcd   :  { %580 = vmatpush.msrb.mxu0 %v537_v40  ;;  %600 = vmatpush.msrb.mxu1 %v553_v49  ;;  %v715_v40 = vld [vmem:[#allocation2 + $0xf0] sm:$0xff]  ;;  %v708_v49 = vld [vmem:[#allocation2 + $0xb8] sm:$0xff] }
  0xce   :  { %639 = vmatpush.msrb.mxu2 %v618_v21  ;;  %723 = vmatpush.msra.mxu3 %v715_v40  ;;  %v880_v21 = vld [vmem:[%s2708_s13 + $0x388] sm:$0xff] }
  0xcf   :  { %581 = vmatpush.msrb.mxu0 %v536_v42  ;;  %601 = vmatpush.msrb.mxu1 %v552_v50  ;;  %v713_v42 = vld [vmem:[#allocation2 + $0xe0] sm:$0xff]  ;;  %v804_v40 = vld [vmem:[%s2708_s13 + $0x128] sm:$0xff] }
  0xd0   :  { %640 = vmatpush.msrb.mxu2 %v617_v22  ;;  %724 = vmatpush.msra.mxu3 %v713_v42  ;;  %v705_v50 = vld [vmem:[#allocation2 + $0xa0] sm:$0xff]  ;;  %v824_v22 = vld [vmem:[%s2708_s13 + $0x1c8] sm:$0xff] }
  0xd1   :  { %582 = vmatpush.msrb.mxu0 %v535_v44  ;;  %602 = vmatpush.msrb.mxu1 %v551_v51  ;;  %v711_v44 = vld [vmem:[#allocation2 + $0xd0] sm:$0xff]  ;;  %v706_v51 = vld [vmem:[#allocation2 + $0xa8] sm:$0xff] }
  0xd2   :  { %641 = vmatpush.msrb.mxu2 %v616_v23  ;;  %725 = vmatpush.msra.mxu3 %v711_v44  ;;  %v819_v23 = vld [vmem:[%s2708_s13 + $0x1a0] sm:$0xff]  ;;  %v860_v42 = vld [vmem:[%s2708_s13 + $0x2e8] sm:$0xff] }
  0xd3   :  { %583 = vmatpush.msrb.mxu0 %v534_v46  ;;  %603 = vmatpush.msrb.mxu1 %v550_v52  ;;  %v709_v46 = vld [vmem:[#allocation2 + $0xc0] sm:$0xff]  ;;  %v703_v52 = vld [vmem:[#allocation2 + $0x90] sm:$0xff]  ;;  %v800_v44 = vld [vmem:[%s2708_s13 + $0x108] sm:$0xff] }
  0xd4   :  { %642 = vmatpush.msrb.mxu2 %v615_v24  ;;  %726 = vmatpush.msra.mxu3 %v709_v46  ;;  %v820_v24 = vld [vmem:[%s2708_s13 + $0x1a8] sm:$0xff] }
  0xd5   :  { %584 = vmatpush.msrb.mxu0 %v533_v48  ;;  %604 = vmatpush.msrb.mxu1 %v549_v53  ;;  %v707_v48 = vld [vmem:[#allocation2 + $0xb0] sm:$0xff]  ;;  %v704_v53 = vld [vmem:[#allocation2 + $0x98] sm:$0xff]  ;;  %v856_v46 = vld [vmem:[%s2708_s13 + $0x2c8] sm:$0xff] }
  0xd6   :  { %643 = vmatpush.msrb.mxu2 %v614_v25  ;;  %727 = vmatpush.msra.mxu3 %v707_v48  ;;  %v875_v25 = vld [vmem:[%s2708_s13 + $0x360] sm:$0xff]  ;;  %v796_v48 = vld [vmem:[%s2708_s13 + $0xe8] sm:$0xff] }
  0xd7   :  { %743 = vmatpush.msra.mxu0 %v716_v41  ;;  %v859_v41 = vld [vmem:[%s2708_s13 + $0x2e0] sm:$0xff] }
  0xd8   :  { %644 = vmatpush.msrb.mxu2 %v613_v26  ;;  %728 = vmatpush.msra.mxu3 %v705_v50  ;;  %v876_v26 = vld [vmem:[%s2708_s13 + $0x368] sm:$0xff] }
  0xd9   :  { %744 = vmatpush.msra.mxu0 %v714_v43  ;;  %v799_v43 = vld [vmem:[%s2708_s13 + $0x100] sm:$0xff]  ;;  %v852_v50 = vld [vmem:[%s2708_s13 + $0x2a8] sm:$0xff] }
  0xda   :  { %645 = vmatpush.msrb.mxu2 %v612_v27  ;;  %729 = vmatpush.msra.mxu3 %v703_v52  ;;  %v815_v27 = vld [vmem:[%s2708_s13 + $0x180] sm:$0xff]  ;;  %v792_v52 = vld [vmem:[%s2708_s13 + $0xc8] sm:$0xff] }
  0xdb   :  { %745 = vmatpush.msra.mxu0 %v712_v45  ;;  %v855_v45 = vld [vmem:[%s2708_s13 + $0x2c0] sm:$0xff] }
  0xdc   :  { %646 = vmatpush.msrb.mxu2 %v611_v28  ;;  %730 = vmatpush.msra.mxu3 %v701_v54  ;;  %v816_v28 = vld [vmem:[%s2708_s13 + $0x188] sm:$0xff] }
  0xdd   :  { %746 = vmatpush.msra.mxu0 %v710_v47  ;;  %v795_v47 = vld [vmem:[%s2708_s13 + $0xe0] sm:$0xff]  ;;  %v848_v54 = vld [vmem:[%s2708_s13 + $0x288] sm:$0xff] }
  0xde   :  { %731 = vmatpush.msra.mxu3 %v699_v56  ;;  %v788_v56 = vld [vmem:[%s2708_s13 + $0xa8] sm:$0xff] }
  0xdf   :  { %747 = vmatpush.msra.mxu0 %v708_v49  ;;  %v851_v49 = vld [vmem:[%s2708_s13 + $0x2a0] sm:$0xff] }
  0xe1   :  { %748 = vmatpush.msra.mxu0 %v706_v51  ;;  %v791_v51 = vld [vmem:[%s2708_s13 + $0xc0] sm:$0xff] }
  0xe3   :  { %749 = vmatpush.msra.mxu0 %v704_v53  ;;  %v847_v53 = vld [vmem:[%s2708_s13 + $0x280] sm:$0xff] }
  0xe5   :  { %750 = vmatpush.msra.mxu0 %v702_v55  ;;  %v787_v55 = vld [vmem:[%s2708_s13 + $0xa0] sm:$0xff] }
  0xe7   :  { %751 = vmatpush.msra.mxu0 %v700_v57  ;;  %v1233_v57 = vld [vmem:[%s2705_s10] ss:$0 sm:$0xff] }
  0xe9   :  { %752 = vmatpush.msra.mxu0 %v698_v59  ;;  %v844_v59 = vld [vmem:[%s2708_s13 + $0x268] sm:$0xff] }
  0xeb   :  { %753 = vmatpush.msra.mxu0 %v696_v61  ;;  %v784_v61 = vld [vmem:[%s2708_s13 + $0x88] sm:$0xff] }
 0x130   :  { %v386_v58 = vpop.f32.mrf.mxu0  ;;  %v406_v1 = vpop.f32.mrf.mxu1 }
 0x131   :  { %v387_v63 = vadd.f32 %v386_v58, %v365_v60  ;;  %v697_v58 = vld [vmem:[#allocation2 + $0x60] sm:$0xff]  ;;  %v695_v60 = vld [vmem:[#allocation2 + $0x50] sm:$0xff] }
 0x132   :  { %732 = vmatpush.msra.mxu3 %v697_v58  ;;  %v843_v58 = vld [vmem:[%s2708_s13 + $0x260] sm:$0xff] }
 0x133   :  { %v407_v3 = vadd.f32 %v406_v1, %v387_v63  ;;  %v694_v63 = vld [vmem:[#allocation2 + $0x48] sm:$0xff] }
 0x134   :  { %733 = vmatpush.msra.mxu3 %v695_v60  ;;  %754 = vmatpush.msra.mxu0 %v694_v63  ;;  %v783_v60 = vld [vmem:[%s2708_s13 + $0x80] sm:$0xff]  ;;  %v840_v63 = vld [vmem:[%s2708_s13 + $0x248] sm:$0xff] }
 0x136   :  { %734 = vmatpush.msra.mxu3 %v693_v62  ;;  %v839_v62 = vld [vmem:[%s2708_s13 + $0x240] sm:$0xff] }
 0x138   :  { %v466_v5 = vpop.f32.mrf.mxu0  ;;  %v486_v12 = vpop.f32.mrf.mxu1 }
 0x139   :  { %v467_v9 = vadd.f32 %v466_v5, %v366_v4  ;;  %v692_v4 = vld [vmem:[#allocation2 + $0x38] sm:$0xff]  ;;  %v689_v5 = vld [vmem:[#allocation2 + $0x20] sm:$0xff] }
 0x13a   :  { %755 = vmatpush.msra.mxu0 %v692_v4  ;;  %v835_v4 = vld [vmem:[%s2708_s13 + $0x220] sm:$0xff] }
 0x13b   :  { %v487_v13 = vadd.f32 %v486_v12, %v467_v9  ;;  %v685_v9 = vld [vmem:[#allocation2] sm:$0xff]  ;;  %v892_v12 = vld [vmem:[%s2708_s13 + $0x3e8] sm:$0xff] }
 0x13d   :  { %v426_v6 = vpop.f32.mrf.mxu2  ;;  %v446_v7 = vpop.f32.mrf.mxu3 }
 0x13e   :  { %v427_v8 = vadd.f32 %v426_v6, %v407_v3  ;;  %v691_v3 = vld [vmem:[#allocation2 + $0x30] sm:$0xff]  ;;  %v690_v6 = vld [vmem:[#allocation2 + $0x28] sm:$0xff] }
 0x13f   :  { %735 = vmatpush.msra.mxu3 %v691_v3  ;;  %756 = vmatpush.msra.mxu0 %v690_v6  ;;  %v775_v6 = vld [vmem:[%s2708_s13 + $0x40] sm:$0xff] }
 0x140   :  { %v447_v10 = vadd.f32 %v446_v7, %v427_v8  ;;  %v687_v7 = vld [vmem:[#allocation2 + $0x10] sm:$0xff]  ;;  %v688_v8 = vld [vmem:[#allocation2 + $0x18] sm:$0xff] }
 0x141   :  { %736 = vmatpush.msra.mxu3 %v689_v5  ;;  %757 = vmatpush.msra.mxu0 %v688_v8  ;;  %v836_v5 = vld [vmem:[%s2708_s13 + $0x228] sm:$0xff] }
 0x142   :  { %v529_v11 = vmul.f32 0.01, %v447_v10 }
 0x143   :  { %737 = vmatpush.msra.mxu3 %v687_v7  ;;  %v776_v7 = vld [vmem:[%s2708_s13 + $0x48] sm:$0xff] }
 0x144   :  { %v531_v14 = vmax.f32 %v447_v10, %v529_v11  ;;  %v686_v10 = vld [vmem:[#allocation2 + $0x8] sm:$0xff]  ;;  %v891_v11 = vld [vmem:[%s2708_s13 + $0x3e0] sm:$0xff] }
 0x145   :  { %v506_v15 = vpop.f32.mrf.mxu2  ;;  %v526_v17 = vpop.f32.mrf.mxu3  ;;  %738 = vmatpush.msra.mxu3 %v685_v9  ;;  %758 = vmatpush.msra.mxu0 %v686_v10  ;;  %v831_v9 = vld [vmem:[%s2708_s13 + $0x200] sm:$0xff]  ;;  %v832_v10 = vld [vmem:[%s2708_s13 + $0x208] sm:$0xff] }
 0x146   :  { %v507_v16 = vadd.f32 %v506_v15, %v487_v13  ;;  %585 = vmatmul.f32.vlgmr.msrb.gmra.mxu0 %v531_v14  ;;  %v887_v13 = vld [vmem:[%s2708_s13 + $0x3c0] sm:$0xff]  ;;  %925 = vmatpush.msra.mxu2 %v891_v11  ;;  %v888_v14 = vld [vmem:[%s2708_s13 + $0x3c8] sm:$0xff] }
 0x147   :  { %965 = vmatpush.msrb.mxu0 %v892_v12  ;;  %v883_v15 = vld [vmem:[%s2708_s13 + $0x3a0] sm:$0xff]  ;;  %v893_v12 = vld [vmem:[%s2708_s13 + $0x3f0] sm:$0xff] }
 0x148   :  { %v527_v18 = vadd.f32 %v526_v17, %v507_v16  ;;  %v884_v16 = vld [vmem:[%s2708_s13 + $0x3a8] sm:$0xff]  ;;  %v827_v17 = vld [vmem:[%s2708_s13 + $0x1e0] sm:$0xff]  ;;  %926 = vmatpush.msra.mxu2 %v887_v13  ;;  %v894_v13 = vld [vmem:[%s2708_s13 + $0x3f8] sm:$0xff] }
 0x149   :  { %966 = vmatpush.msrb.mxu0 %v888_v14  ;;  %905 = vmatpush.msra.mxu1 %v827_v17  ;;  %v771_v14 = vld [vmem:[%s2708_s13 + $0x20] sm:$0xff]  ;;  %v890_v17 = vld [vmem:[%s2708_s13 + $0x3d8] sm:$0xff] }
 0x14a   :  { %v530_v19 = vmul.f32 0.01, %v527_v18  ;;  %927 = vmatpush.msra.mxu2 %v883_v15  ;;  %v772_v15 = vld [vmem:[%s2708_s13 + $0x28] sm:$0xff] }
 0x14b   :  { %967 = vmatpush.msrb.mxu0 %v884_v16  ;;  %v889_v16 = vld [vmem:[%s2708_s13 + $0x3d0] sm:$0xff] }
 0x14c   :  { %v532_v20 = vmax.f32 %v527_v18, %v530_v19  ;;  %v828_v18 = vld [vmem:[%s2708_s13 + $0x1e8] sm:$0xff]  ;;  %v823_v19 = vld [vmem:[%s2708_s13 + $0x1c0] sm:$0xff] }
 0x14d   :  { %906 = vmatpush.msra.mxu1 %v823_v19  ;;  %968 = vmatpush.msrb.mxu0 %v880_v21  ;;  %v768_v19 = vld [vmem:[%s2708_s13 + $0x8] sm:$0xff]  ;;  %v886_v21 = vld [vmem:[%s2708_s13 + $0x3b8] sm:$0xff] }
 0x14e   :  { %605 = vmatmul.f32.vlgmr.msrb.gmra.mxu1 %v532_v20  ;;  %v879_v20 = vld [vmem:[%s2708_s13 + $0x380] sm:$0xff] }
 0x14f   :  { %928 = vmatpush.msra.mxu2 %v879_v20  ;;  %907 = vmatpush.msra.mxu1 %v819_v23  ;;  %v885_v20 = vld [vmem:[%s2708_s13 + $0x3b0] sm:$0xff]  ;;  %v830_v23 = vld [vmem:[%s2708_s13 + $0x1f8] sm:$0xff] }
 0x150   :  { %969 = vmatpush.msrb.mxu0 %v876_v26  ;;  %v825_v26 = vld [vmem:[%s2708_s13 + $0x1d0] sm:$0xff] }
 0x151   :  { %929 = vmatpush.msra.mxu2 %v875_v25  ;;  %908 = vmatpush.msra.mxu1 %v815_v27  ;;  %v882_v25 = vld [vmem:[%s2708_s13 + $0x398] sm:$0xff] }
 0x152   :  { %970 = vmatpush.msrb.mxu0 %v872_v30  ;;  %v826_v27 = vld [vmem:[%s2708_s13 + $0x1d8] sm:$0xff]  ;;  %v821_v30 = vld [vmem:[%s2708_s13 + $0x1b0] sm:$0xff] }
 0x153   :  { %930 = vmatpush.msra.mxu2 %v871_v29  ;;  %909 = vmatpush.msra.mxu1 %v811_v31  ;;  %v878_v29 = vld [vmem:[%s2708_s13 + $0x378] sm:$0xff] }
 0x154   :  { %v822_v31 = vld [vmem:[%s2708_s13 + $0x1b8] sm:$0xff] }
 0x1c3   :  { %v586_v33 = vpop.f32.mrf.mxu0 }
 0x1c4   :  { %v587_v34 = vadd.f32 %v1231_v32, %v586_v33  ;;  %v812_v32 = vld [vmem:[%s2708_s13 + $0x168] sm:$0xff]  ;;  %v867_v33 = vld [vmem:[%s2708_s13 + $0x320] sm:$0xff] }
 0x1c5   :  { %931 = vmatpush.msra.mxu2 %v867_v33  ;;  %v874_v33 = vld [vmem:[%s2708_s13 + $0x358] sm:$0xff] }
 0x1cb   :  { %v606_v35 = vpop.f32.mrf.mxu1 }
 0x1cc   :  { %v607_v36 = vadd.f32 %v606_v35, %v587_v34  ;;  %v868_v34 = vld [vmem:[%s2708_s13 + $0x328] sm:$0xff]  ;;  %v807_v35 = vld [vmem:[%s2708_s13 + $0x140] sm:$0xff] }
 0x1cd   :  { %971 = vmatpush.msrb.mxu0 %v868_v34  ;;  %910 = vmatpush.msra.mxu1 %v807_v35  ;;  %v817_v34 = vld [vmem:[%s2708_s13 + $0x190] sm:$0xff]  ;;  %v818_v35 = vld [vmem:[%s2708_s13 + $0x198] sm:$0xff] }
 0x1ce   :  { %v609_v37 = vmul.f32 0.01, %v607_v36 }
 0x1cf   :  { %911 = vmatpush.msra.mxu1 %v803_v39  ;;  %v814_v39 = vld [vmem:[%s2708_s13 + $0x178] sm:$0xff] }
 0x1d0   :  { %v610_v38 = vmax.f32 %v607_v36, %v609_v37  ;;  %v808_v36 = vld [vmem:[%s2708_s13 + $0x148] sm:$0xff]  ;;  %v863_v37 = vld [vmem:[%s2708_s13 + $0x300] sm:$0xff] }
 0x1d1   :  { %932 = vmatpush.msra.mxu2 %v863_v37  ;;  %912 = vmatpush.msra.mxu1 %v799_v43  ;;  %v870_v37 = vld [vmem:[%s2708_s13 + $0x338] sm:$0xff]  ;;  %v861_v43 = vld [vmem:[%s2708_s13 + $0x2f0] sm:$0xff] }
 0x1d2   :  { %647 = vmatmul.f32.vlgmr.msrb.gmra.mxu2 %v610_v38  ;;  %v864_v38 = vld [vmem:[%s2708_s13 + $0x308] sm:$0xff] }
 0x1d3   :  { %972 = vmatpush.msrb.mxu0 %v864_v38  ;;  %933 = vmatpush.msra.mxu2 %v859_v41  ;;  %v813_v38 = vld [vmem:[%s2708_s13 + $0x170] sm:$0xff]  ;;  %v866_v41 = vld [vmem:[%s2708_s13 + $0x318] sm:$0xff] }
 0x1d4   :  { %913 = vmatpush.msra.mxu1 %v795_v47  ;;  %v857_v47 = vld [vmem:[%s2708_s13 + $0x2d0] sm:$0xff] }
 0x1d5   :  { %973 = vmatpush.msrb.mxu0 %v860_v42  ;;  %934 = vmatpush.msra.mxu2 %v855_v45  ;;  %v809_v42 = vld [vmem:[%s2708_s13 + $0x150] sm:$0xff]  ;;  %v862_v45 = vld [vmem:[%s2708_s13 + $0x2f8] sm:$0xff] }
 0x1d6   :  { %914 = vmatpush.msra.mxu1 %v791_v51  ;;  %v853_v51 = vld [vmem:[%s2708_s13 + $0x2b0] sm:$0xff] }
 0x1d7   :  { %974 = vmatpush.msrb.mxu0 %v856_v46  ;;  %935 = vmatpush.msra.mxu2 %v851_v49  ;;  %v805_v46 = vld [vmem:[%s2708_s13 + $0x130] sm:$0xff]  ;;  %v858_v49 = vld [vmem:[%s2708_s13 + $0x2d8] sm:$0xff] }
 0x1d8   :  { %915 = vmatpush.msra.mxu1 %v787_v55  ;;  %v849_v55 = vld [vmem:[%s2708_s13 + $0x290] sm:$0xff] }
 0x1d9   :  { %975 = vmatpush.msrb.mxu0 %v852_v50  ;;  %936 = vmatpush.msra.mxu2 %v847_v53  ;;  %v801_v50 = vld [vmem:[%s2708_s13 + $0x110] sm:$0xff]  ;;  %v854_v53 = vld [vmem:[%s2708_s13 + $0x2b8] sm:$0xff] }
 0x1da   :  { %916 = vmatpush.msra.mxu1 %v783_v60  ;;  %v794_v60 = vld [vmem:[%s2708_s13 + $0xd8] sm:$0xff] }
 0x1db   :  { %976 = vmatpush.msrb.mxu0 %v848_v54  ;;  %937 = vmatpush.msra.mxu2 %v843_v58  ;;  %v797_v54 = vld [vmem:[%s2708_s13 + $0xf0] sm:$0xff] }
 0x1dc   :  { %v793_v58 = vld [vmem:[%s2708_s13 + $0xd0] sm:$0xff] }
 0x1dd   :  { %977 = vmatpush.msrb.mxu0 %v844_v59  ;;  %938 = vmatpush.msra.mxu2 %v839_v62  ;;  %v845_v59 = vld [vmem:[%s2708_s13 + $0x270] sm:$0xff] }
 0x1de   :  { %v789_v62 = vld [vmem:[%s2708_s13 + $0xb0] sm:$0xff] }
 0x1df   :  { %978 = vmatpush.msrb.mxu0 %v840_v63  ;;  %939 = vmatpush.msra.mxu2 %v835_v4  ;;  %v841_v63 = vld [vmem:[%s2708_s13 + $0x250] sm:$0xff]  ;;  %v786_v4 = vld [vmem:[%s2708_s13 + $0x98] sm:$0xff] }
 0x1e1   :  { %979 = vmatpush.msrb.mxu0 %v836_v5  ;;  %940 = vmatpush.msra.mxu2 %v831_v9  ;;  %v838_v5 = vld [vmem:[%s2708_s13 + $0x238] sm:$0xff] }
 0x1e2   :  { %v834_v9 = vld [vmem:[%s2708_s13 + $0x218] sm:$0xff] }
 0x1e3   :  { %980 = vmatpush.msrb.mxu0 %v832_v10  ;;  %1005 = vmatpush.msrb.mxu2 %v893_v12  ;;  %v777_v10 = vld [vmem:[%s2708_s13 + $0x50] sm:$0xff] }
 0x1e4   :  { %v773_v12 = vld [vmem:[%s2708_s13 + $0x30] sm:$0xff] }
 0x1e5   :  { %1006 = vmatpush.msrb.mxu2 %v889_v16  ;;  %v717_v16 = vld [vmem:[%s2707_s12] sm:$0x3] }
 0x1e7   :  { %1007 = vmatpush.msrb.mxu2 %v885_v20 }
 0x255   :  { %v648_v1 = vpop.f32.mrf.mxu2 }
 0x256   :  { %v649_v2 = vadd.f32 %v1232_v0, %v648_v1  ;;  %v779_v1 = vld [vmem:[%s2708_s13 + $0x60] sm:$0xff] }
 0x257   :  { %917 = vmatpush.msra.mxu1 %v779_v1  ;;  %v842_v1 = vld [vmem:[%s2708_s13 + $0x258] sm:$0xff] }
 0x258   :  { %1227 = vmatmul.msk.f32.vlgmr.msrb.gmra.mxu3 %vm659_vm0, %v649_v2  ;;  %v780_v2 = vld [vmem:[%s2708_s13 + $0x68] sm:$0xff] }
 0x259   :  { %945 = vmatpush.msrb.mxu3 %v828_v18  ;;  %918 = vmatpush.msra.mxu1 %v775_v6  ;;  %v767_v18 = vld [vmem:[%s2708_s13] sm:$0xff]  ;;  %v781_v6 = vld [vmem:[%s2708_s13 + $0x70] sm:$0xff] }
 0x25b   :  { %946 = vmatpush.msrb.mxu3 %v824_v22  ;;  %919 = vmatpush.msra.mxu1 %v771_v14  ;;  %v829_v22 = vld [vmem:[%s2708_s13 + $0x1f0] sm:$0xff] }
 0x25c   :  { %v769_v14 = vld [vmem:[%s2708_s13 + $0x10] sm:$0xff] }
 0x25d   :  { %947 = vmatpush.msrb.mxu3 %v820_v24  ;;  %920 = vmatpush.msra.mxu1 %v767_v18  ;;  %v881_v24 = vld [vmem:[%s2708_s13 + $0x390] sm:$0xff] }
 0x25e   :  { %1008 = vmatpush.msrb.mxu2 %v881_v24  ;;  %v1136_v24 = vld [vmem:[%s2710_s15 + $0x1f8] sm:$0xff] }
 0x25f   :  { %948 = vmatpush.msrb.mxu3 %v816_v28  ;;  %985 = vmatpush.msrb.mxu1 %v829_v22  ;;  %v877_v28 = vld [vmem:[%s2708_s13 + $0x370] sm:$0xff] }
 0x260   :  { %1009 = vmatpush.msrb.mxu2 %v877_v28 }
 0x261   :  { %949 = vmatpush.msrb.mxu3 %v812_v32  ;;  %986 = vmatpush.msrb.mxu1 %v825_v26  ;;  %v873_v32 = vld [vmem:[%s2708_s13 + $0x350] sm:$0xff] }
 0x262   :  { %1010 = vmatpush.msrb.mxu2 %v873_v32  ;;  %v1120_v32 = vld [vmem:[%s2710_s15 + $0x178] sm:$0xff] }
 0x263   :  { %950 = vmatpush.msrb.mxu3 %v808_v36  ;;  %987 = vmatpush.msrb.mxu1 %v821_v30  ;;  %v869_v36 = vld [vmem:[%s2708_s13 + $0x330] sm:$0xff] }
 0x264   :  { %1011 = vmatpush.msrb.mxu2 %v869_v36  ;;  %v1086_v36 = vld [vmem:[%s2710_s15 + $0x68] sm:$0xff] }
 0x265   :  { %951 = vmatpush.msrb.mxu3 %v804_v40  ;;  %988 = vmatpush.msrb.mxu1 %v817_v34  ;;  %v865_v40 = vld [vmem:[%s2708_s13 + $0x310] sm:$0xff] }
 0x266   :  { %1012 = vmatpush.msrb.mxu2 %v865_v40  ;;  %v1119_v34 = vld [vmem:[%s2710_s15 + $0x170] sm:$0xff]  ;;  %v1117_v40 = vld [vmem:[%s2710_s15 + $0x160] sm:$0xff] }
 0x267   :  { %952 = vmatpush.msrb.mxu3 %v800_v44  ;;  %989 = vmatpush.msrb.mxu1 %v813_v38  ;;  %v810_v44 = vld [vmem:[%s2708_s13 + $0x158] sm:$0xff] }
 0x268   :  { %1013 = vmatpush.msrb.mxu2 %v861_v43  ;;  %v1100_v38 = vld [vmem:[%s2710_s15 + $0xd8] sm:$0xff]  ;;  %v1082_v43 = vld [vmem:[%s2710_s15 + $0x48] sm:$0xff] }
 0x269   :  { %953 = vmatpush.msrb.mxu3 %v796_v48  ;;  %990 = vmatpush.msrb.mxu1 %v809_v42  ;;  %v806_v48 = vld [vmem:[%s2708_s13 + $0x138] sm:$0xff]  ;;  %v1083_v42 = vld [vmem:[%s2710_s15 + $0x50] sm:$0xff] }
 0x26a   :  { %1014 = vmatpush.msrb.mxu2 %v857_v47  ;;  %v1116_v47 = vld [vmem:[%s2710_s15 + $0x158] sm:$0xff] }
 0x26b   :  { %954 = vmatpush.msrb.mxu3 %v792_v52  ;;  %991 = vmatpush.msrb.mxu1 %v805_v46  ;;  %v802_v52 = vld [vmem:[%s2708_s13 + $0x118] sm:$0xff]  ;;  %v1099_v46 = vld [vmem:[%s2710_s15 + $0xd0] sm:$0xff] }
 0x26c   :  { %1015 = vmatpush.msrb.mxu2 %v853_v51  ;;  %v1115_v51 = vld [vmem:[%s2710_s15 + $0x150] sm:$0xff] }
 0x26d   :  { %955 = vmatpush.msrb.mxu3 %v788_v56  ;;  %992 = vmatpush.msrb.mxu1 %v801_v50  ;;  %v798_v56 = vld [vmem:[%s2708_s13 + $0xf8] sm:$0xff]  ;;  %v1098_v50 = vld [vmem:[%s2710_s15 + $0xc8] sm:$0xff] }
 0x26e   :  { %1016 = vmatpush.msrb.mxu2 %v849_v55  ;;  %v1114_v55 = vld [vmem:[%s2710_s15 + $0x148] sm:$0xff] }
 0x26f   :  { %956 = vmatpush.msrb.mxu3 %v784_v61  ;;  %993 = vmatpush.msrb.mxu1 %v797_v54  ;;  %v846_v61 = vld [vmem:[%s2708_s13 + $0x278] sm:$0xff]  ;;  %v1097_v54 = vld [vmem:[%s2710_s15 + $0xc0] sm:$0xff] }
 0x270   :  { %1017 = vmatpush.msrb.mxu2 %v845_v59  ;;  %v1113_v59 = vld [vmem:[%s2710_s15 + $0x140] sm:$0xff] }
 0x271   :  { %957 = vmatpush.msrb.mxu3 %v780_v2  ;;  %994 = vmatpush.msrb.mxu1 %v793_v58  ;;  %v785_v2 = vld [vmem:[%s2708_s13 + $0x90] sm:$0xff]  ;;  %v1096_v58 = vld [vmem:[%s2710_s15 + $0xb8] sm:$0xff] }
 0x272   :  { %1018 = vmatpush.msrb.mxu2 %v841_v63  ;;  %v1112_v63 = vld [vmem:[%s2710_s15 + $0x138] sm:$0xff] }
 0x273   :  { %958 = vmatpush.msrb.mxu3 %v776_v7  ;;  %995 = vmatpush.msrb.mxu1 %v789_v62  ;;  %v833_v7 = vld [vmem:[%s2708_s13 + $0x210] sm:$0xff] }
 0x274   :  { %v1095_v62 = vld [vmem:[%s2710_s15 + $0xb0] sm:$0xff] }
 0x275   :  { %959 = vmatpush.msrb.mxu3 %v772_v15  ;;  %996 = vmatpush.msrb.mxu1 %v785_v2  ;;  %v770_v15 = vld [vmem:[%s2708_s13 + $0x18] sm:$0xff]  ;;  %v1094_v2 = vld [vmem:[%s2710_s15 + $0xa8] sm:$0xff] }
 0x277   :  { %960 = vmatpush.msrb.mxu3 %v768_v19  ;;  %997 = vmatpush.msrb.mxu1 %v781_v6  ;;  %v1093_v6 = vld [vmem:[%s2710_s15 + $0xa0] sm:$0xff] }
 0x279   :  { %998 = vmatpush.msrb.mxu1 %v777_v10  ;;  %v1092_v10 = vld [vmem:[%s2710_s15 + $0x98] sm:$0xff] }
 0x27b   :  { %999 = vmatpush.msrb.mxu1 %v773_v12  ;;  %v1128_v12 = vld [vmem:[%s2710_s15 + $0x1b8] sm:$0xff] }
 0x27d   :  { %1000 = vmatpush.msrb.mxu1 %v769_v14  ;;  %v1108_v14 = vld [vmem:[%s2710_s15 + $0x118] sm:$0xff] }
 0x2db   :  { %v680_v0 = vpop.f32.mrf.mxu3 }
 0x2dc   :  { %v681_v3 = vadd.f32 %v1233_v57, %v680_v0  ;;  %v850_v57 = vld [vmem:[%s2708_s13 + $0x298] sm:$0xff] }
 0x2dd   :  { %v790_v0 = vld [vmem:[%s2708_s13 + $0xb8] sm:$0xff] }
 0x2de   :  { %v683_v8 = vmul.f32 0.01, %v681_v3 }
 0x2e0   :  { %v684_v11 = vmax.f32 %v681_v3, %v683_v8  ;;  %v837_v3 = vld [vmem:[%s2708_s13 + $0x230] sm:$0xff]  ;;  %v782_v8 = vld [vmem:[%s2708_s13 + $0x78] sm:$0xff] }
 0x2e1   :  { %1019 = vmatpush.msrb.mxu2 %v837_v3  ;;  %v1111_v3 = vld [vmem:[%s2710_s15 + $0x130] sm:$0xff] }
 0x2e2   :  { %739 = vmatmul.f32.vlgmr.msra.gmra.mxu3 %v684_v11  ;;  %759 = vmatmul.f32.vlgmr.msra.gmra.mxu0 %v684_v11  ;;  %v778_v11 = vld [vmem:[%s2708_s13 + $0x58] sm:$0xff] }
 0x2e3   :  { %1045 = vmatpush.msra.mxu0 %v894_v13  ;;  %1025 = vmatpush.msra.mxu3 %v830_v23  ;;  %v774_v13 = vld [vmem:[%s2708_s13 + $0x38] sm:$0xff] }
 0x2e4   :  { %1020 = vmatpush.msrb.mxu2 %v833_v7  ;;  %v1104_v23 = vld [vmem:[%s2710_s15 + $0xf8] sm:$0xff]  ;;  %v1110_v7 = vld [vmem:[%s2710_s15 + $0x128] sm:$0xff] }
 0x2e5   :  { %1046 = vmatpush.msra.mxu0 %v890_v17  ;;  %1026 = vmatpush.msra.mxu3 %v826_v27  ;;  %v720_v17 = vperm.slane %v717_v16, 1  ;;  %v1103_v27 = vld [vmem:[%s2710_s15 + $0xf0] sm:$0xff] }
 0x2e7   :  { %1047 = vmatpush.msra.mxu0 %v886_v21  ;;  %1027 = vmatpush.msra.mxu3 %v822_v31  ;;  %v719_v21 = vperm.slane %v717_v16, 0  ;;  %v1088_v31 = vld [vmem:[%s2710_s15 + $0x78] sm:$0xff]  ;;  %v1090_v16 = vld [vmem:[%s2710_s15 + $0x88] sm:$0xff] }
 0x2e9   :  { %1048 = vmatpush.msra.mxu0 %v882_v25  ;;  %1028 = vmatpush.msra.mxu3 %v818_v35  ;;  %v1101_v35 = vld [vmem:[%s2710_s15 + $0xe0] sm:$0xff] }
 0x2eb   :  { %1049 = vmatpush.msra.mxu0 %v878_v29  ;;  %1029 = vmatpush.msra.mxu3 %v814_v39  ;;  %v1102_v29 = vld [vmem:[%s2710_s15 + $0xe8] sm:$0xff]  ;;  %v1085_v39 = vld [vmem:[%s2710_s15 + $0x60] sm:$0xff] }
 0x2ed   :  { %1050 = vmatpush.msra.mxu0 %v874_v33  ;;  %1030 = vmatpush.msra.mxu3 %v810_v44  ;;  %v1087_v33 = vld [vmem:[%s2710_s15 + $0x70] sm:$0xff]  ;;  %v1081_v44 = vld [vmem:[%s2710_s15 + $0x40] sm:$0xff] }
 0x2ef   :  { %1051 = vmatpush.msra.mxu0 %v870_v37  ;;  %1031 = vmatpush.msra.mxu3 %v806_v48  ;;  %v1118_v37 = vld [vmem:[%s2710_s15 + $0x168] sm:$0xff]  ;;  %v1135_v48 = vld [vmem:[%s2710_s15 + $0x1f0] sm:$0xff] }
 0x2f1   :  { %1052 = vmatpush.msra.mxu0 %v866_v41  ;;  %1032 = vmatpush.msra.mxu3 %v802_v52  ;;  %v1084_v41 = vld [vmem:[%s2710_s15 + $0x58] sm:$0xff]  ;;  %v1134_v52 = vld [vmem:[%s2710_s15 + $0x1e8] sm:$0xff] }
 0x2f3   :  { %1053 = vmatpush.msra.mxu0 %v862_v45  ;;  %1033 = vmatpush.msra.mxu3 %v798_v56  ;;  %v1080_v45 = vld [vmem:[%s2710_s15 + $0x38] sm:$0xff]  ;;  %v1133_v56 = vld [vmem:[%s2710_s15 + $0x1e0] sm:$0xff] }
 0x2f5   :  { %1054 = vmatpush.msra.mxu0 %v858_v49  ;;  %1034 = vmatpush.msra.mxu3 %v794_v60  ;;  %v1079_v49 = vld [vmem:[%s2710_s15 + $0x30] sm:$0xff]  ;;  %v1132_v60 = vld [vmem:[%s2710_s15 + $0x1d8] sm:$0xff] }
 0x2f7   :  { %1055 = vmatpush.msra.mxu0 %v854_v53  ;;  %1035 = vmatpush.msra.mxu3 %v790_v0  ;;  %v1078_v53 = vld [vmem:[%s2710_s15 + $0x28] sm:$0xff]  ;;  %v1131_v0 = vld [vmem:[%s2710_s15 + $0x1d0] sm:$0xff] }
 0x2f9   :  { %1056 = vmatpush.msra.mxu0 %v850_v57  ;;  %1036 = vmatpush.msra.mxu3 %v786_v4  ;;  %v1077_v57 = vld [vmem:[%s2710_s15 + $0x20] sm:$0xff]  ;;  %v1130_v4 = vld [vmem:[%s2710_s15 + $0x1c8] sm:$0xff] }
 0x2fb   :  { %1057 = vmatpush.msra.mxu0 %v846_v61  ;;  %1037 = vmatpush.msra.mxu3 %v782_v8  ;;  %v1076_v61 = vld [vmem:[%s2710_s15 + $0x18] sm:$0xff]  ;;  %v1129_v8 = vld [vmem:[%s2710_s15 + $0x1c0] sm:$0xff] }
 0x2fd   :  { %1058 = vmatpush.msra.mxu0 %v842_v1  ;;  %1038 = vmatpush.msra.mxu3 %v778_v11  ;;  %v1075_v1 = vld [vmem:[%s2710_s15 + $0x10] sm:$0xff]  ;;  %v1109_v11 = vld [vmem:[%s2710_s15 + $0x120] sm:$0xff] }
 0x2ff   :  { %1059 = vmatpush.msra.mxu0 %v838_v5  ;;  %1039 = vmatpush.msra.mxu3 %v774_v13  ;;  %v1074_v5 = vld [vmem:[%s2710_s15 + $0x8] sm:$0xff]  ;;  %v1091_v13 = vld [vmem:[%s2710_s15 + $0x90] sm:$0xff] }
 0x301   :  { %1060 = vmatpush.msra.mxu0 %v834_v9  ;;  %1040 = vmatpush.msra.mxu3 %v770_v15  ;;  %v1073_v9 = vld [vmem:[%s2710_s15] sm:$0xff]  ;;  %v1127_v15 = vld [vmem:[%s2710_s15 + $0x1b0] sm:$0xff] }
 0x35f   :  { %v760_v18 = vpop.f32.mrf.mxu0 }
 0x360   :  { %v761_v19 = vadd.f32 %v760_v18, %v720_v17  ;;  %v1107_v17 = vld [vmem:[%s2710_s15 + $0x110] sm:$0xff]  ;;  %v1126_v18 = vld [vmem:[%s2710_s15 + $0x1a8] sm:$0xff] }
 0x362   :  { %v764_v20 = vmul.f32 0.01, %v761_v19 }
 0x364   :  { %v766_v22 = vmax.f32 %v761_v19, %v764_v20  ;;  %v1089_v19 = vld [vmem:[%s2710_s15 + $0x80] sm:$0xff]  ;;  %v1106_v20 = vld [vmem:[%s2710_s15 + $0x108] sm:$0xff] }
 0x365   :  { %v740_v25 = vpop.f32.mrf.mxu3 }
 0x366   :  { %v741_v26 = vadd.f32 %v740_v25, %v719_v21  ;;  %941 = vmatmul.f32.vlgmr.msra.gmra.mxu2 %v766_v22  ;;  %981 = vmatmul.f32.vlgmr.msrb.gmra.mxu0 %v766_v22  ;;  %v1125_v21 = vld [vmem:[%s2710_s15 + $0x1a0] sm:$0xff]  ;;  %v1122_v25 = vld [vmem:[%s2710_s15 + $0x188] sm:$0xff] }
 0x367   :  { %1161 = vmatpush.msra.mxu2 %v1104_v23  ;;  %1201 = vmatpush.msrb.mxu0 %v1136_v24  ;;  %v1124_v23 = vld [vmem:[%s2710_s15 + $0x198] sm:$0xff]  ;;  %v1123_v24 = vld [vmem:[%s2710_s15 + $0x190] sm:$0xff] }
 0x368   :  { %v763_v28 = vmul.f32 0.01, %v741_v26 }
 0x369   :  { %1162 = vmatpush.msra.mxu2 %v1103_v27  ;;  %1202 = vmatpush.msrb.mxu0 %v1135_v48  ;;  %v895_v27 = vld [vmem:[%s2709_s14] sm:$0xf] }
 0x36a   :  { %v765_v30 = vmax.f32 %v741_v26, %v763_v28  ;;  %v1121_v26 = vld [vmem:[%s2710_s15 + $0x180] sm:$0xff]  ;;  %v897_v28 = vperm.slane %v895_v27, 0 }
 0x36b   :  { %1163 = vmatpush.msra.mxu2 %v1102_v29  ;;  %1203 = vmatpush.msrb.mxu0 %v1134_v52 }
 0x36c   :  { %921 = vmatmul.f32.vlgmr.msra.gmra.mxu1 %v765_v30  ;;  %961 = vmatmul.f32.vlgmr.msrb.gmra.mxu3 %v765_v30 }
 0x36d   :  { %1141 = vmatpush.msra.mxu1 %v1088_v31  ;;  %1181 = vmatpush.msrb.mxu3 %v1120_v32 }
 0x36e   :  { %1021 = vmatmul.f32.vlgmr.msrb.gmra.mxu2 %v766_v22  ;;  %1061 = vmatmul.f32.vlgmr.msra.gmra.mxu0 %v766_v22  ;;  %v1105_v22 = vld [vmem:[%s2710_s15 + $0x100] sm:$0xff] }
 0x36f   :  { %1142 = vmatpush.msra.mxu1 %v1087_v33  ;;  %1182 = vmatpush.msrb.mxu3 %v1119_v34  ;;  %v898_v33 = vperm.slane %v895_v27, 1 }
 0x370   :  { %1164 = vmatpush.msra.mxu2 %v1101_v35  ;;  %1204 = vmatpush.msrb.mxu0 %v1133_v56  ;;  %v899_v35 = vperm.slane %v895_v27, 2  ;;  %v1234_v56 = vld [vmem:[%s2711_s16] ss:$0 sm:$0xff] }
 0x371   :  { %1143 = vmatpush.msra.mxu1 %v1086_v36  ;;  %1183 = vmatpush.msrb.mxu3 %v1118_v37 }
 0x372   :  { %1165 = vmatpush.msra.mxu2 %v1100_v38  ;;  %1205 = vmatpush.msrb.mxu0 %v1132_v60 }
 0x373   :  { %1144 = vmatpush.msra.mxu1 %v1085_v39  ;;  %1184 = vmatpush.msrb.mxu3 %v1117_v40 }
 0x374   :  { %1001 = vmatmul.f32.vlgmr.msrb.gmra.mxu1 %v765_v30  ;;  %1041 = vmatmul.f32.vlgmr.msra.gmra.mxu3 %v765_v30 }
 0x375   :  { %1145 = vmatpush.msra.mxu1 %v1084_v41  ;;  %1166 = vmatpush.msra.mxu2 %v1099_v46  ;;  %v900_v46 = vperm.slane %v895_v27, 3 }
 0x376   :  { %1185 = vmatpush.msrb.mxu3 %v1116_v47  ;;  %1206 = vmatpush.msrb.mxu0 %v1131_v0 }
 0x377   :  { %1146 = vmatpush.msra.mxu1 %v1083_v42  ;;  %1167 = vmatpush.msra.mxu2 %v1098_v50 }
 0x378   :  { %1186 = vmatpush.msrb.mxu3 %v1115_v51  ;;  %1207 = vmatpush.msrb.mxu0 %v1130_v4 }
 0x379   :  { %1147 = vmatpush.msra.mxu1 %v1082_v43  ;;  %1168 = vmatpush.msra.mxu2 %v1097_v54 }
 0x37a   :  { %1187 = vmatpush.msrb.mxu3 %v1114_v55  ;;  %1208 = vmatpush.msrb.mxu0 %v1129_v8 }
 0x37b   :  { %1148 = vmatpush.msra.mxu1 %v1081_v44  ;;  %1169 = vmatpush.msra.mxu2 %v1096_v58 }
 0x37c   :  { %1188 = vmatpush.msrb.mxu3 %v1113_v59  ;;  %1209 = vmatpush.msrb.mxu0 %v1128_v12 }
 0x37d   :  { %1149 = vmatpush.msra.mxu1 %v1080_v45  ;;  %1170 = vmatpush.msra.mxu2 %v1095_v62 }
 0x37e   :  { %1189 = vmatpush.msrb.mxu3 %v1112_v63  ;;  %1210 = vmatpush.msrb.mxu0 %v1127_v15 }
 0x37f   :  { %1150 = vmatpush.msra.mxu1 %v1079_v49  ;;  %1171 = vmatpush.msra.mxu2 %v1094_v2 }
 0x380   :  { %1190 = vmatpush.msrb.mxu3 %v1111_v3  ;;  %1211 = vmatpush.msrb.mxu0 %v1126_v18 }
 0x381   :  { %1151 = vmatpush.msra.mxu1 %v1078_v53  ;;  %1172 = vmatpush.msra.mxu2 %v1093_v6 }
 0x382   :  { %1191 = vmatpush.msrb.mxu3 %v1110_v7  ;;  %1212 = vmatpush.msrb.mxu0 %v1125_v21 }
 0x383   :  { %1152 = vmatpush.msra.mxu1 %v1077_v57  ;;  %1173 = vmatpush.msra.mxu2 %v1092_v10 }
 0x384   :  { %1192 = vmatpush.msrb.mxu3 %v1109_v11  ;;  %1213 = vmatpush.msrb.mxu0 %v1124_v23 }
 0x385   :  { %1153 = vmatpush.msra.mxu1 %v1076_v61  ;;  %1174 = vmatpush.msra.mxu2 %v1091_v13 }
 0x386   :  { %1193 = vmatpush.msrb.mxu3 %v1108_v14  ;;  %1214 = vmatpush.msrb.mxu0 %v1123_v24 }
 0x387   :  { %1154 = vmatpush.msra.mxu1 %v1075_v1  ;;  %1175 = vmatpush.msra.mxu2 %v1090_v16 }
 0x388   :  { %1194 = vmatpush.msrb.mxu3 %v1107_v17  ;;  %1215 = vmatpush.msrb.mxu0 %v1122_v25 }
 0x389   :  { %1155 = vmatpush.msra.mxu1 %v1074_v5  ;;  %1176 = vmatpush.msra.mxu2 %v1089_v19 }
 0x38a   :  { %1195 = vmatpush.msrb.mxu3 %v1106_v20  ;;  %1216 = vmatpush.msrb.mxu0 %v1121_v26 }
 0x38b   :  { %1156 = vmatpush.msra.mxu1 %v1073_v9 }
 0x38c   :  { %1196 = vmatpush.msrb.mxu3 %v1105_v22 }
 0x3e3   :  { %v982_v36 = vpop.f32.mrf.mxu0 }
 0x3e9   :  { %v922_v29 = vpop.f32.mrf.mxu1  ;;  %v942_v30 = vpop.f32.mrf.mxu2 }
 0x3ea   :  { %v923_v31 = vadd.f32 %v922_v29, %v897_v28 }
 0x3eb   :  { %v1062_v52 = vpop.f32.mrf.mxu0 }
 0x3ec   :  { %v943_v32 = vadd.f32 %v942_v30, %v923_v31 }
 0x3ee   :  { %v1065_v34 = vmul.f32 0.01, %v943_v32 }
 0x3ef   :  { %v962_v37 = vpop.f32.mrf.mxu3 }
 0x3f0   :  { %v1069_v38 = vmax.f32 %v943_v32, %v1065_v34  ;;  %v963_v39 = vadd.f32 %v962_v37, %v898_v33 }
 0x3f1   :  { %v1002_v40 = vpop.f32.mrf.mxu1  ;;  %v1022_v43 = vpop.f32.mrf.mxu2 }
 0x3f2   :  { %v983_v41 = vadd.f32 %v982_v36, %v963_v39  ;;  %v1003_v42 = vadd.f32 %v1002_v40, %v899_v35  ;;  %1157 = vmatmul.f32.vlgmr.msra.gmra.mxu1 %v1069_v38 }
 0x3f4   :  { %v1066_v44 = vmul.f32 0.01, %v983_v41  ;;  %v1023_v45 = vadd.f32 %v1022_v43, %v1003_v42 }
 0x3f6   :  { %v1070_v47 = vmax.f32 %v983_v41, %v1066_v44  ;;  %v1067_v48 = vmul.f32 0.01, %v1023_v45 }
 0x3f7   :  { %v1042_v49 = vpop.f32.mrf.mxu3 }
 0x3f8   :  { %v1071_v50 = vmax.f32 %v1023_v45, %v1067_v48  ;;  %v1043_v51 = vadd.f32 %v1042_v49, %v900_v46  ;;  %1177 = vmatmul.f32.vlgmr.msra.gmra.mxu2 %v1070_v47 }
 0x3fa   :  { %v1063_v53 = vadd.f32 %v1062_v52, %v1043_v51  ;;  %1197 = vmatmul.f32.vlgmr.msrb.gmra.mxu3 %v1071_v50 }
 0x3fc   :  { %v1068_v54 = vmul.f32 0.01, %v1063_v53 }
 0x3fe   :  { %v1072_v55 = vmax.f32 %v1063_v53, %v1068_v54 }
 0x400   :  { %1217 = vmatmul.f32.vlgmr.msrb.gmra.mxu0 %v1072_v55 }
 0x46f   :  { %v1158_v57 = vpop.f32.mrf.mxu1 }
 0x470   :  { %v1159_v58 = vadd.f32 %v1234_v56, %v1158_v57 }
 0x47b   :  { %v1178_v59 = vpop.f32.mrf.mxu2 }
 0x47c   :  { %v1179_v60 = vadd.f32 %v1178_v59, %v1159_v58 }
 0x47d   :  { %v1198_v61 = vpop.f32.mrf.mxu3  ;;  %v1218_v63 = vpop.f32.mrf.mxu0 }
 0x47e   :  { %v1199_v62 = vadd.f32 %v1198_v61, %v1179_v60 }
 0x480   :  { %v1219_v0 = vadd.f32 %v1218_v63, %v1199_v62 }
 0x482   :  { %1221 = vst [vmem:[%s2712_s17] sm:$0xff] %v1219_v0 }
 0x483   :  { %1226 = vsyncpa [#allocation3], 1 }

</bundles_post_ra>
